<compile_context>
chip_gen: v7x
topology: tpu7x:2x2x1
jax: 0.10.0
libtpu: 0.0.40
codegen_flags: <defaults>
</compile_context>

<pallas_src>
import numpy as np
import jax
import jax.numpy as jnp
from jax.experimental import pallas as pl
from jax.experimental.pallas import tpu as pltpu


# ---- fused token table: 128-aligned row segments (per-feature bands) -----------------
V_TOK = 2560
TOK_SEGS = (
    (0,    1024),   # f0: z_encoder            (1000 rows used, cols 0:z_dim)
    (1024, 256),    # f1: global_degree_encoder (200 rows used, cols z_dim:z_dim+hc)
    (1280, 1024),   # f2: local_degree_encoder  (1000 rows used, cols z_dim+hc:)
    (2304, 128),    # f3: dist_encoder          (100 rows used, all cols)
    (2432, 128),    # f4: order/graph segment
)
LOCAL_ORDER0 = 0    # order_encoder(0)
LOCAL_ORDER1 = 1    # order_encoder(1)
LOCAL_GRAPH = 3     # graph_token
# index -1 (sentinel) never matches a segment iota -> contributes a zero row.

# ---- fused attention-bias table: three 128-row bands ----------------------------------
V_BIAS = 384
BIAS_SEG = 128      # adjacency @ 0, spatial_pos @ 128, graph_edge @ 256

BLOCK_N_MAX = 256   # token-row block (sublanes)
BLOCK_M_MAX = 2048  # bias-lane block (lanes), multiple of 512


def _round_up(x, m):
    return ((x + m - 1) // m) * m


# ----------------------------------- Pallas kernels ------------------------------------

def token_lookup_kernel(tok_idx_ref, tok_tab_ref, tok_out_ref):
    # One segment-local one-hot + one small-K matmul per feature; segments are disjoint
    # table row-bands, so the sum of the five dots equals the fused multi-hot matmul but
    # with ~9x fewer VALU compare/OR/cast element-ops.
    n = tok_idx_ref.shape[0]
    d = tok_out_ref.shape[1]
    acc = jnp.zeros((n, d), jnp.float32)
    for f, (off, size) in enumerate(TOK_SEGS):
        iota = jax.lax.broadcasted_iota(jnp.int32, (n, size), 1)
        one_hot = (tok_idx_ref[:, f:f + 1] == iota).astype(jnp.float32)
        acc = acc + jnp.dot(one_hot, tok_tab_ref[off:off + size, :],
                            preferred_element_type=jnp.float32)
    tok_out_ref[...] = acc


def attn_bias_kernel(bias_idx_ref, bias_tab_t_ref, bias_out_ref):
    # Transposed form: table.T @ one_hot -> [H, block_m] so every store is lane-dense.
    # Each of the 3 bias features compares only against its own 128-row sublane band.
    h = bias_out_ref.shape[0]
    m = bias_out_ref.shape[1]
    acc = jnp.zeros((h, m), jnp.float32)
    for f in range(3):
        off = f * BIAS_SEG
        iota = jax.lax.broadcasted_iota(jnp.int32, (BIAS_SEG, m), 0)
        one_hot = (bias_idx_ref[f:f + 1, :] == iota).astype(jnp.float32)
        acc = acc + jnp.dot(bias_tab_t_ref[:, off:off + BIAS_SEG], one_hot,
                            preferred_element_type=jnp.float32)
    bias_out_ref[...] = acc


# --------------------------------- parameter setup ------------------------------------

def init_tokenizer_params(key, hidden_dim=48, num_heads=4, max_z=1000):
    hc = hidden_dim // 3
    z_dim = hidden_dim - 2 * hc
    ks = jax.random.split(key, 9)

    def emb(k, vocab, dim, pad_idx=None):
        w = 0.02 * jax.random.normal(k, (vocab, dim), jnp.float32)
        if pad_idx is not None:
            w = w.at[pad_idx].set(0.0)
        return w

    return dict(
        z_tab=emb(ks[0], max_z, z_dim, max_z - 1),          # z_encoder
        gdeg_tab=emb(ks[1], 200, hc, 199),                  # global_degree_encoder
        ldeg_tab=emb(ks[2], 1000, hc, 199),                 # local_degree_encoder
        dist_tab=emb(ks[3], 100, hidden_dim, 99),           # dist_encoder
        order_tab=emb(ks[4], 2, hidden_dim),                # order_encoder (type_id)
        graph_token=emb(ks[5], 1, hidden_dim),              # graph_token
        edge_bias_tab=emb(ks[6], 100, num_heads, 0),        # edge_bias_encoder
        spatial_tab=emb(ks[7], 100, num_heads, 0),          # spatial_pos_bias_encoder
        gnode_tab=emb(ks[8], 3, num_heads, 0),              # graph_node_bias_encoder
    )


def build_fused_tables(params, hidden_dim=48, num_heads=4):
    """One-time preprocessing (hoisted out of the forward path)."""
    hc = hidden_dim // 3
    z_dim = hidden_dim - 2 * hc

    tok = jnp.zeros((V_TOK, hidden_dim), jnp.float32)
    tok = tok.at[0:1000, 0:z_dim].set(params["z_tab"])                       # cols 0:16
    tok = tok.at[1024:1224, z_dim:z_dim + hc].set(params["gdeg_tab"])        # cols 16:32
    tok = tok.at[1280:2280, z_dim + hc:].set(params["ldeg_tab"])             # cols 32:48
    tok = tok.at[2304:2404, :].set(params["dist_tab"])
    tok = tok.at[2432:2434, :].set(params["order_tab"])
    tok = tok.at[2432 + LOCAL_GRAPH, :].set(params["graph_token"][0])

    bias = jnp.zeros((V_BIAS, num_heads), jnp.float32)
    bias = bias.at[0:100].set(params["edge_bias_tab"])
    bias = bias.at[128:228].set(params["spatial_tab"])
    bias = bias.at[256:259].set(params["gnode_tab"])
    return dict(tok_tab=tok, bias_tab_t=bias.T)   # bias table transposed once, here


# ------------------------------------ forward glue -------------------------------------

def graph_feature_tokenizer_forward(fused, batched_data, hidden_dim=48,
                                    num_heads=4, max_nodes=16):
    node_num = batched_data["node_num"]      # python list of ints
    edge_num = batched_data["edge_num"]
    b = len(node_num)
    T = max_nodes                            # STATIC token length -> fixed kernel shapes
    t1 = T + 1                               # +1 graph special token slot
    max_n = int(max(node_num))               # used only for cheap output slicing
    n_tot = int(sum(node_num))

    # ---- masks / padded_index (tiny int ops, same semantics as torch get_batch) -------
    node_num_a = jnp.asarray(node_num, jnp.int32)[:, None]
    edge_num_a = jnp.asarray(edge_num, jnp.int32)[:, None]
    tpos = jnp.arange(T, dtype=jnp.int32)[None, :]
    padded_node_mask = tpos < node_num_a                         # [B, T]
    padding_mask_n = tpos >= (node_num_a + edge_num_a)           # [B, T]

    idxn = jnp.where(padded_node_mask, jnp.broadcast_to(tpos, (b, T)), 0)
    padded_index = jnp.stack([idxn, idxn], axis=-1).astype(jnp.int32)   # [B, T, 2]
    # order == 1 everywhere in the node-only config (matches the torch reference).
    order_n = (padded_index[..., 0] == padded_index[..., 1]).astype(jnp.int32)

    # ---- segment-local token indices (-1 == "no row") ---------------------------------
    if n_tot > 0:
        offsets = np.concatenate([[0], np.cumsum(np.asarray(node_num))[:-1]]).astype(np.int64)
        gidx = jnp.asarray(np.minimum(offsets[:, None] + np.arange(T)[None, :], n_tot - 1))

        def node_vals(flat, vocab):
            v = jnp.clip(jnp.asarray(flat).astype(jnp.int32)[gidx], 0, vocab - 1)
            return jnp.where(padded_node_mask, v, -1)            # [B, T]
    else:
        def node_vals(flat, vocab):
            return jnp.full((b, T), -1, jnp.int32)

    z_v = node_vals(batched_data["z_data"], 1000)
    gd_v = node_vals(batched_data["global_degree"], 200)
    ld_v = node_vals(batched_data["local_degree"], 1000)
    di_v = node_vals(batched_data["dist"], 100)
    or_v = jnp.where(padding_mask_n, -1, LOCAL_ORDER0 + order_n)

    def with_special(col, special_local):    # prepend the graph-token slot (position 0)
        return jnp.concatenate(
            [jnp.full((b, 1), special_local, jnp.int32), col], axis=1)

    tok_idx = jnp.stack([with_special(z_v, -1),
                         with_special(gd_v, -1),
                         with_special(ld_v, -1),
                         with_special(di_v, -1),
                         with_special(or_v, LOCAL_GRAPH)],
                        axis=-1).reshape(b * t1, 5).astype(jnp.int32)

    n_rows = b * t1
    block_n = min(BLOCK_N_MAX, _round_up(n_rows, 8))
    n_pad = _round_up(n_rows, block_n)
    tok_idx = jnp.pad(tok_idx, ((0, n_pad - n_rows), (0, 0)), constant_values=-1)

    # ---- segment-local attn-bias indices (row/col 0 padding == index 0 -> zero row) ---
    m_bias = b * t1 * t1
    block_m = min(BLOCK_M_MAX, _round_up(m_bias, 128))
    m_pad = _round_up(m_bias, block_m)

    def bias_vals(x, vocab):
        mat = jnp.asarray(x).reshape(b, max_nodes, max_nodes).astype(jnp.int32)
        mat = jnp.clip(mat, 0, vocab - 1)
        mat = jnp.pad(mat, ((0, 0), (1, 0), (1, 0)))             # get_attn_bias padding
        return mat.reshape(1, m_bias)

    bias_idx = jnp.concatenate([bias_vals(batched_data["adjacency_matrix"], 100),
                                bias_vals(batched_data["spatial_pos"], 100),
                                bias_vals(batched_data["graph_edge_mat"], 3)],
                               axis=0)                            # [3, M]
    bias_idx = jnp.pad(bias_idx, ((0, 0), (0, m_pad - m_bias)), constant_values=-1)
    # TODO(synk): the pad/reshape index prep above could itself move into the kernel with
    # in-kernel iota div/mod masking to save one small HBM round-trip.

    vmem_limit = 16 * 1024 * 1024

    # ---- token features: gridded over rows, parallel across TensorCores ---------------
    tok_flat = pl.pallas_call(
        token_lookup_kernel,
        grid=(n_pad // block_n,),
        out_shape=jax.ShapeDtypeStruct((n_pad, hidden_dim), jnp.float32),
        in_specs=[pl.BlockSpec((block_n, 5), lambda i: (i, 0)),
                  pl.BlockSpec((V_TOK, hidden_dim), lambda i: (0, 0))],
        out_specs=pl.BlockSpec((block_n, hidden_dim), lambda i: (i, 0)),
        compiler_params=pltpu.CompilerParams(
            dimension_semantics=("parallel",),
            vmem_limit_bytes=vmem_limit),
        cost_estimate=pl.CostEstimate(
            flops=2 * n_pad * V_TOK * hidden_dim,
            transcendentals=0,
            bytes_accessed=(n_pad * 5 * 4 + V_TOK * hidden_dim * 4
                            + n_pad * hidden_dim * 4)),
    )(tok_idx, fused["tok_tab"])

    # ---- attention bias: gridded over the flattened (B*(T+1)^2) lane axis -------------
    bias_t = pl.pallas_call(
        attn_bias_kernel,
        grid=(m_pad // block_m,),
        out_shape=jax.ShapeDtypeStruct((num_heads, m_pad), jnp.float32),
        in_specs=[pl.BlockSpec((3, block_m), lambda i: (0, i)),
                  pl.BlockSpec((num_heads, V_BIAS), lambda i: (0, 0))],
        out_specs=pl.BlockSpec((num_heads, block_m), lambda i: (0, i)),
        compiler_params=pltpu.CompilerParams(
            dimension_semantics=("parallel",),
            vmem_limit_bytes=vmem_limit),
        cost_estimate=pl.CostEstimate(
            flops=2 * m_pad * V_BIAS * num_heads,
            transcendentals=0,
            bytes_accessed=(3 * m_pad * 4 + V_BIAS * num_heads * 4
                            + num_heads * m_pad * 4)),
    )(bias_idx, fused["bias_tab_t"])

    # ---- cheap wrapper-side slices back to the torch shapes (kernels stay static) -----
    n1 = max_n + 1
    padded_feature = tok_flat[:n_rows].reshape(b, t1, hidden_dim)[:, :n1]
    padding_mask_out = jnp.concatenate(
        [jnp.zeros((b, 1), dtype=bool), padding_mask_n], axis=1)[:, :n1]
    attn_bias = bias_t[:, :m_bias].reshape(num_heads, b, t1, t1)[:, :, :n1, :n1]
    padded_index_out = padded_index[:, :max_n]

    # TODO(synk): rand_node_id / orf_node_id / lap_node_id / GCN / node- & edge-feature
    # encoder branches are disabled by the configured module flags and not implemented.
    return padded_feature, padding_mask_out, padded_index_out, attn_bias


# --------------------------------------- example ---------------------------------------

if __name__ == "__main__":
    key = jax.random.PRNGKey(0)
    hidden_dim, num_heads, max_nodes = 48, 4, 16
    node_num = [6, 8]
    edge_num = [0, 0]
    b, n_tot = len(node_num), sum(node_num)

    kp, kd = jax.random.split(key)
    params = init_tokenizer_params(kp, hidden_dim, num_heads)
    fused = build_fused_tables(params, hidden_dim, num_heads)

    ks = jax.random.split(kd, 7)
    batched_data = {
        "node_num": node_num,
        "edge_num": edge_num,
        "z_data": jax.random.randint(ks[0], (n_tot,), 0, 999),
        "global_degree": jax.random.randint(ks[1], (n_tot,), 0, 199),
        "local_degree": jax.random.randint(ks[2], (n_tot,), 0, 199),
        "dist": jax.random.randint(ks[3], (n_tot,), 0, 99),
        "adjacency_matrix": jax.random.randint(ks[4], (b, max_nodes * max_nodes), 0, 2),
        "spatial_pos": jax.random.randint(ks[5], (b, max_nodes * max_nodes), 0, 100),
        "graph_edge_mat": jax.random.randint(ks[6], (b, max_nodes * max_nodes), 0, 3),
        "edge_index": jnp.zeros((2, 0), jnp.int32),   # unused (use_edge_features=False)
    }

    outs = graph_feature_tokenizer_forward(fused, batched_data,
                                           hidden_dim, num_heads, max_nodes)
    jax.block_until_ready(outs)
    print("KERNEL_OK")
</pallas_src>

<mosaic_0001>
module attributes {stable_mosaic.version = 11 : i64} {
  func.func @token_lookup_kernel(%arg0: i32, %arg1: memref<40x5xi32, #tpu.memory_space<vmem>>, %arg2: memref<2560x48xf32, #tpu.memory_space<vmem>>, %arg3: memref<40x48xf32, #tpu.memory_space<vmem>>) attributes {dimension_semantics = [#tpu.dimension_semantics<parallel>], iteration_bounds = array<i64: 1>, scalar_prefetch = 0 : i64, scratch_operands = 0 : i64, tpu.core_type = #tpu.core_type<tc>, window_params = [{transform_indices = @transform_0, window_bounds = array<i64: 40, 5>}, {pipeline_mode = #tpu.pipeline_mode<synchronous>, transform_indices = @transform_1, window_bounds = array<i64: 2560, 48>}, {transform_indices = @transform_2, window_bounds = array<i64: 40, 48>}]} {
    %cst = arith.constant 0.000000e+00 : f32
    %0 = vector.broadcast %cst : f32 to vector<40x48xf32>
    %1 = tpu.iota {dimensions = array<i32: 1>} : vector<40x1024xi32>
    %c0 = arith.constant 0 : index
    %c0_0 = arith.constant 0 : index
    %2 = vector.load %arg1[%c0, %c0_0] : memref<40x5xi32, #tpu.memory_space<vmem>>, vector<40x1xi32>
    %3 = vector.broadcast %2 : vector<40x1xi32> to vector<40x1024xi32>
    %4 = arith.cmpi eq, %3, %1 : vector<40x1024xi32>
    %5 = arith.extui %4 : vector<40x1024xi1> to vector<40x1024xi32>
    %6 = arith.sitofp %5 : vector<40x1024xi32> to vector<40x1024xf32>
    %c0_1 = arith.constant 0 : index
    %c0_2 = arith.constant 0 : index
    %7 = vector.load %arg2[%c0_1, %c0_2] : memref<2560x48xf32, #tpu.memory_space<vmem>>, vector<1024x48xf32>
    %cst_3 = arith.constant dense<0.000000e+00> : vector<40x48xf32>
    %8 = tpu.matmul %6, %7, %cst_3 {dimension_numbers = #tpu.dot_dimension_numbers<[1], [0], [0], [1], [0, 0, 1, 1], [], []>} : vector<40x1024xf32>, vector<1024x48xf32>, vector<40x48xf32> -> vector<40x48xf32>
    %9 = arith.addf %0, %8 : vector<40x48xf32>
    %10 = tpu.iota {dimensions = array<i32: 1>} : vector<40x256xi32>
    %c0_4 = arith.constant 0 : index
    %c1 = arith.constant 1 : index
    %11 = vector.load %arg1[%c0_4, %c1] : memref<40x5xi32, #tpu.memory_space<vmem>>, vector<40x1xi32>
    %12 = vector.broadcast %11 : vector<40x1xi32> to vector<40x256xi32>
    %13 = arith.cmpi eq, %12, %10 : vector<40x256xi32>
    %14 = arith.extui %13 : vector<40x256xi1> to vector<40x256xi32>
    %15 = arith.sitofp %14 : vector<40x256xi32> to vector<40x256xf32>
    %c1024 = arith.constant 1024 : index
    %c0_5 = arith.constant 0 : index
    %16 = vector.load %arg2[%c1024, %c0_5] : memref<2560x48xf32, #tpu.memory_space<vmem>>, vector<256x48xf32>
    %cst_6 = arith.constant dense<0.000000e+00> : vector<40x48xf32>
    %17 = tpu.matmul %15, %16, %cst_6 {dimension_numbers = #tpu.dot_dimension_numbers<[1], [0], [0], [1], [0, 0, 1, 1], [], []>} : vector<40x256xf32>, vector<256x48xf32>, vector<40x48xf32> -> vector<40x48xf32>
    %18 = arith.addf %9, %17 : vector<40x48xf32>
    %19 = tpu.iota {dimensions = array<i32: 1>} : vector<40x1024xi32>
    %c0_7 = arith.constant 0 : index
    %c2 = arith.constant 2 : index
    %20 = vector.load %arg1[%c0_7, %c2] : memref<40x5xi32, #tpu.memory_space<vmem>>, vector<40x1xi32>
    %21 = vector.broadcast %20 : vector<40x1xi32> to vector<40x1024xi32>
    %22 = arith.cmpi eq, %21, %19 : vector<40x1024xi32>
    %23 = arith.extui %22 : vector<40x1024xi1> to vector<40x1024xi32>
    %24 = arith.sitofp %23 : vector<40x1024xi32> to vector<40x1024xf32>
    %c1280 = arith.constant 1280 : index
    %c0_8 = arith.constant 0 : index
    %25 = vector.load %arg2[%c1280, %c0_8] : memref<2560x48xf32, #tpu.memory_space<vmem>>, vector<1024x48xf32>
    %cst_9 = arith.constant dense<0.000000e+00> : vector<40x48xf32>
    %26 = tpu.matmul %24, %25, %cst_9 {dimension_numbers = #tpu.dot_dimension_numbers<[1], [0], [0], [1], [0, 0, 1, 1], [], []>} : vector<40x1024xf32>, vector<1024x48xf32>, vector<40x48xf32> -> vector<40x48xf32>
    %27 = arith.addf %18, %26 : vector<40x48xf32>
    %28 = tpu.iota {dimensions = array<i32: 1>} : vector<40x128xi32>
    %c0_10 = arith.constant 0 : index
    %c3 = arith.constant 3 : index
    %29 = vector.load %arg1[%c0_10, %c3] : memref<40x5xi32, #tpu.memory_space<vmem>>, vector<40x1xi32>
    %30 = vector.broadcast %29 : vector<40x1xi32> to vector<40x128xi32>
    %31 = arith.cmpi eq, %30, %28 : vector<40x128xi32>
    %32 = arith.extui %31 : vector<40x128xi1> to vector<40x128xi32>
    %33 = arith.sitofp %32 : vector<40x128xi32> to vector<40x128xf32>
    %c2304 = arith.constant 2304 : index
    %c0_11 = arith.constant 0 : index
    %34 = vector.load %arg2[%c2304, %c0_11] : memref<2560x48xf32, #tpu.memory_space<vmem>>, vector<128x48xf32>
    %cst_12 = arith.constant dense<0.000000e+00> : vector<40x48xf32>
    %35 = tpu.matmul %33, %34, %cst_12 {dimension_numbers = #tpu.dot_dimension_numbers<[1], [0], [0], [1], [0, 0, 1, 1], [], []>} : vector<40x128xf32>, vector<128x48xf32>, vector<40x48xf32> -> vector<40x48xf32>
    %36 = arith.addf %27, %35 : vector<40x48xf32>
    %37 = tpu.iota {dimensions = array<i32: 1>} : vector<40x128xi32>
    %c0_13 = arith.constant 0 : index
    %c4 = arith.constant 4 : index
    %38 = vector.load %arg1[%c0_13, %c4] : memref<40x5xi32, #tpu.memory_space<vmem>>, vector<40x1xi32>
    %39 = vector.broadcast %38 : vector<40x1xi32> to vector<40x128xi32>
    %40 = arith.cmpi eq, %39, %37 : vector<40x128xi32>
    %41 = arith.extui %40 : vector<40x128xi1> to vector<40x128xi32>
    %42 = arith.sitofp %41 : vector<40x128xi32> to vector<40x128xf32>
    %c2432 = arith.constant 2432 : index
    %c0_14 = arith.constant 0 : index
    %43 = vector.load %arg2[%c2432, %c0_14] : memref<2560x48xf32, #tpu.memory_space<vmem>>, vector<128x48xf32>
    %cst_15 = arith.constant dense<0.000000e+00> : vector<40x48xf32>
    %44 = tpu.matmul %42, %43, %cst_15 {dimension_numbers = #tpu.dot_dimension_numbers<[1], [0], [0], [1], [0, 0, 1, 1], [], []>} : vector<40x128xf32>, vector<128x48xf32>, vector<40x48xf32> -> vector<40x48xf32>
    %45 = arith.addf %36, %44 : vector<40x48xf32>
    %c0_16 = arith.constant 0 : index
    %c0_17 = arith.constant 0 : index
    %46 = vector.load %arg3[%c0_16, %c0_17] : memref<40x48xf32, #tpu.memory_space<vmem>>, vector<40x48xf32>
    tpu.vector_store %arg3[%c0_16, %c0_17], %45 {strides = array<i32>} : memref<40x48xf32, #tpu.memory_space<vmem>>, vector<40x48xf32>,
    return
  }
  func.func @transform_0(%arg0: i32) -> (i32, i32) {
    %c0_i32 = arith.constant 0 : i32
    %c0_i32_0 = arith.constant 0 : i32
    return %arg0, %c0_i32 : i32, i32
  }
  func.func @transform_1(%arg0: i32) -> (i32, i32) {
    %c0_i32 = arith.constant 0 : i32
    %c0_i32_0 = arith.constant 0 : i32
    %c0_i32_1 = arith.constant 0 : i32
    return %c0_i32, %c0_i32_0 : i32, i32
  }
  func.func @transform_2(%arg0: i32) -> (i32, i32) {
    %c0_i32 = arith.constant 0 : i32
    %c0_i32_0 = arith.constant 0 : i32
    return %arg0, %c0_i32 : i32, i32
  }
}

</mosaic_0001>

<bundles_post_ra>
// kernel: tpu_custom_call.1
= control target key start
LH: loop header
LB: loop body
LE: loop exit
PB: predicated region body
PF: predicated region fallthrough
CT: control target
= control target key end

     0   :  { %v2922_v2 = vmov 0   ;;  %v2923_v21 = vmov 1   ;;  %s4416_s0 = inlined_call_operand.vmem [shape: s32[40,5], index: 0, kind: input, shape index: {}]   ;;  %s4417_s1 = inlined_call_operand.vmem [shape: f32[2560,48], index: 1, kind: input, shape index: {}]   ;;  %s4418_s2 = inlined_call_operand.hbm [shape: f32[40,48], index: 2, kind: output, shape index: {}]  }
   0x1   :  { %v2952_v0 = vld [vmem:[%s4416_s0 + $0x8] sm:$0xff]  ;;  %v2957_v1 = vld [vmem:[%s4416_s0] sm:$0xff]  ;;  %2886 = vset.pattern.permute.xlu1 %v2922_v2  ;;  %2884 = vset.pattern.permute.xlu0 %v2922_v2  ;;  %v2964_v3 = vld [vmem:[%s4416_s0 + $0x10] sm:$0xff] }
   0x2   :  { %v177_v4 = vld [vmem:[%s4417_s1 + $0x80] sm:$0xff]  ;;  %30 = vperm.xlu1 %2886, %v2952_v0   ;;  %27 = vperm.xlu0 %2884, %v2957_v1   ;;  %v178_v5 = vld [vmem:[%s4417_s1 + $0x88] sm:$0xff]  ;;  %v179_v10 = vld [vmem:[%s4417_s1 + $0x90] sm:$0xff] }
   0x3   :  { %v161_v6 = vld [vmem:[%s4417_s1] sm:$0xff]  ;;  %v162_v7 = vld [vmem:[%s4417_s1 + $0x8] sm:$0xff]  ;;  %v2539_v8 = vpack.c.bf16 %v178_v5, %v177_v4  ;;  %v180_v11 = vld [vmem:[%s4417_s1 + $0x98] sm:$0xff] }
   0x4   :  { %v2541_v9 = vpack.c.bf16 %v162_v7, %v161_v6  ;;  %v350_v12 = vld [vmem:[%s4417_s1 + $0x480] sm:$0xff]  ;;  %v2543_v13 = vpack.c.bf16 %v180_v11, %v179_v10  ;;  %v351_v14 = vld [vmem:[%s4417_s1 + $0x488] sm:$0xff]  ;;  %v163_v15 = vld [vmem:[%s4417_s1 + $0x10] sm:$0xff] }
   0x5   :  { %v164_v16 = vld [vmem:[%s4417_s1 + $0x18] sm:$0xff]  ;;  %2540 = vmatprep.subr.bf16.mxu1 %v2539_v8  ;;  %v2507_v17 = vpack.c.bf16 %v351_v14, %v350_v12  ;;  %v334_v18 = vld [vmem:[%s4417_s1 + $0x400] sm:$0xff]  ;;  %v335_v19 = vld [vmem:[%s4417_s1 + $0x408] sm:$0xff] }
   0x6   :  { %v181_v20 = vld [vmem:[%s4417_s1 + $0xa0] sm:$0xff]  ;;  %33 = vperm.xlu1 %2886, %v2964_v3   ;;  %2885 = vset.pattern.permute.xlu0 %v2923_v21  ;;  %v2509_v22 = vpack.c.bf16 %v335_v19, %v334_v18  ;;  %v182_v23 = vld [vmem:[%s4417_s1 + $0xa8] sm:$0xff]  ;;  %v352_v24 = vld [vmem:[%s4417_s1 + $0x490] sm:$0xff]  ;;  %v2545_v29 = vpack.c.bf16 %v164_v16, %v163_v15 }
   0x7   :  { %v353_v25 = vld [vmem:[%s4417_s1 + $0x498] sm:$0xff]  ;;  %290 = vperm.xlu0 %2885, %v2957_v1   ;;  %2542 = vmatpush3.bf16.msra.mxu1 %v2541_v9  ;;  %v336_v27 = vld [vmem:[%s4417_s1 + $0x410] sm:$0xff]  ;;  %v165_v30 = vld [vmem:[%s4417_s1 + $0x20] sm:$0xff]  ;;  %v2547_v32 = vpack.c.bf16 %v182_v23, %v181_v20  ;;  %v2924_v9 = vmov 2  }
   0x8   :  { %v2511_v26 = vpack.c.bf16 %v353_v25, %v352_v24  ;;  %v3025_v28 = vld [vmem:[%s4416_s0 + $0x18] sm:$0xff]  ;;  %2544 = vmatprep.subr.bf16.mxu1 %v2543_v13  ;;  %2508 = vmatprep.subr.bf16.mxu0 %v2507_v17  ;;  %v166_v33 = vld [vmem:[%s4417_s1 + $0x28] sm:$0xff]  ;;  %v354_v35 = vld [vmem:[%s4417_s1 + $0x4a0] sm:$0xff] }
   0x9   :  { %v337_v31 = vld [vmem:[%s4417_s1 + $0x418] sm:$0xff]  ;;  %2510 = vmatpush3.bf16.msra.mxu0 %v2509_v22  ;;  %v355_v36 = vld [vmem:[%s4417_s1 + $0x4a8] sm:$0xff]  ;;  %v183_v37 = vld [vmem:[%s4417_s1 + $0xb0] sm:$0xff]  ;;  %v2549_v42 = vpack.c.bf16 %v166_v33, %v165_v30 }
   0xa   :  { %v2513_v34 = vpack.c.bf16 %v337_v31, %v336_v27  ;;  %2887 = vset.pattern.permute.xlu1 %v2923_v21  ;;  %2512 = vmatprep.subr.bf16.mxu0 %v2511_v26  ;;  %v184_v38 = vld [vmem:[%s4417_s1 + $0xb8] sm:$0xff]  ;;  %v2515_v39 = vpack.c.bf16 %v355_v36, %v354_v35  ;;  %v338_v40 = vld [vmem:[%s4417_s1 + $0x420] sm:$0xff]  ;;  %v339_v41 = vld [vmem:[%s4417_s1 + $0x428] sm:$0xff] }
   0xb   :  { %293 = vperm.xlu1 %2887, %v2952_v0   ;;  %2888 = vset.pattern.permute.xlu0 %v2922_v2  ;;  %v356_v43 = vld [vmem:[%s4417_s1 + $0x4b0] sm:$0xff]  ;;  %v357_v44 = vld [vmem:[%s4417_s1 + $0x4b8] sm:$0xff]  ;;  %v2551_v45 = vpack.c.bf16 %v184_v38, %v183_v37  ;;  %v2517_v48 = vpack.c.bf16 %v339_v41, %v338_v40  ;;  %v185_v49 = vld [vmem:[%s4417_s1 + $0xc0] sm:$0xff] }
   0xc   :  { %36 = vperm.xlu0 %2888, %v3025_v28   ;;  %2546 = vmatpush3.bf16.msra.mxu1 %v2545_v29  ;;  %v167_v46 = vld [vmem:[%s4417_s1 + $0x30] sm:$0xff]  ;;  %v168_v47 = vld [vmem:[%s4417_s1 + $0x38] sm:$0xff]  ;;  %v186_v50 = vld [vmem:[%s4417_s1 + $0xc8] sm:$0xff]  ;;  %v2519_v51 = vpack.c.bf16 %v357_v44, %v356_v43  ;;  %v2925_v44 = vmov 3  }
   0xd   :  { %2548 = vmatprep.subr.bf16.mxu1 %v2547_v32  ;;  %2514 = vmatpush3.bf16.msra.mxu0 %v2513_v34  ;;  %v340_v52 = vld [vmem:[%s4417_s1 + $0x430] sm:$0xff]  ;;  %v341_v53 = vld [vmem:[%s4417_s1 + $0x438] sm:$0xff]  ;;  %v2553_v54 = vpack.c.bf16 %v168_v47, %v167_v46  ;;  %v358_v55 = vld [vmem:[%s4417_s1 + $0x4c0] sm:$0xff]  ;;  %v2555_v58 = vpack.c.bf16 %v186_v50, %v185_v49 }
   0xe   :  { %2516 = vmatprep.subr.bf16.mxu0 %v2515_v39  ;;  %v359_v56 = vld [vmem:[%s4417_s1 + $0x4c8] sm:$0xff]  ;;  %v3093_v57 = vld [vmem:[%s4416_s0 + $0x20] sm:$0xff]  ;;  %v2521_v61 = vpack.c.bf16 %v341_v53, %v340_v52  ;;  %v187_v62 = vld [vmem:[%s4417_s1 + $0xd0] sm:$0xff] }
   0xf   :  { %296 = vperm.xlu1 %2887, %v2964_v3   ;;  %v169_v59 = vld [vmem:[%s4417_s1 + $0x40] sm:$0xff]  ;;  %v170_v60 = vld [vmem:[%s4417_s1 + $0x48] sm:$0xff]  ;;  %v188_v63 = vld [vmem:[%s4417_s1 + $0xd8] sm:$0xff]  ;;  %v2523_v4 = vpack.c.bf16 %v359_v56, %v358_v55 }
  0x10   :  { %2890 = vset.pattern.permute.xlu0 %v2923_v21  ;;  %2550 = vmatpush3.bf16.msra.mxu1 %v2549_v42  ;;  %v342_v5 = vld [vmem:[%s4417_s1 + $0x440] sm:$0xff]  ;;  %v343_v6 = vld [vmem:[%s4417_s1 + $0x448] sm:$0xff]  ;;  %v2557_v7 = vpack.c.bf16 %v170_v60, %v169_v59  ;;  %v360_v8 = vld [vmem:[%s4417_s1 + $0x4d0] sm:$0xff]  ;;  %v2559_v10 = vpack.c.bf16 %v188_v63, %v187_v62 }
  0x11   :  { %299 = vperm.xlu0 %2890, %v3025_v28   ;;  %2552 = vmatprep.subr.bf16.mxu1 %v2551_v45  ;;  %v171_v11 = vld [vmem:[%s4417_s1 + $0x50] sm:$0xff]  ;;  %v172_v12 = vld [vmem:[%s4417_s1 + $0x58] sm:$0xff]  ;;  %v2525_v13 = vpack.c.bf16 %v343_v6, %v342_v5  ;;  %v189_v14 = vld [vmem:[%s4417_s1 + $0xe0] sm:$0xff] }
  0x12   :  { %2518 = vmatpush3.bf16.msra.mxu0 %v2517_v48  ;;  %v190_v15 = vld [vmem:[%s4417_s1 + $0xe8] sm:$0xff]  ;;  %v344_v17 = vld [vmem:[%s4417_s1 + $0x450] sm:$0xff]  ;;  %v345_v18 = vld [vmem:[%s4417_s1 + $0x458] sm:$0xff]  ;;  %v2561_v19 = vpack.c.bf16 %v172_v12, %v171_v11 }
  0x13   :  { %2889 = vset.pattern.permute.xlu1 %v2922_v2  ;;  %2520 = vmatprep.subr.bf16.mxu0 %v2519_v51  ;;  %v361_v2 = vld [vmem:[%s4417_s1 + $0x4d8] sm:$0xff]  ;;  %v362_v20 = vld [vmem:[%s4417_s1 + $0x4e0] sm:$0xff]  ;;  %v363_v22 = vld [vmem:[%s4417_s1 + $0x4e8] sm:$0xff]  ;;  %v2563_v23 = vpack.c.bf16 %v190_v15, %v189_v14  ;;  %v2529_v25 = vpack.c.bf16 %v345_v18, %v344_v17  ;;  %v2926_v51 = vmov 4  }
  0x14   :  { %39 = vperm.xlu1 %2889, %v3093_v57   ;;  %2554 = vmatpush3.bf16.msra.mxu1 %v2553_v54  ;;  %v2527_v16 = vpack.c.bf16 %v361_v2, %v360_v8  ;;  %v173_v24 = vld [vmem:[%s4417_s1 + $0x60] sm:$0xff]  ;;  %v191_v26 = vld [vmem:[%s4417_s1 + $0xf0] sm:$0xff]  ;;  %v192_v27 = vld [vmem:[%s4417_s1 + $0xf8] sm:$0xff]  ;;  %v2531_v29 = vpack.c.bf16 %v363_v22, %v362_v20 }
  0x15   :  { %2893 = vset.pattern.permute.xlu0 %v2924_v9  ;;  %2556 = vmatprep.subr.bf16.mxu1 %v2555_v58  ;;  %v346_v30 = vld [vmem:[%s4417_s1 + $0x460] sm:$0xff]  ;;  %v347_v31 = vld [vmem:[%s4417_s1 + $0x468] sm:$0xff]  ;;  %v364_v33 = vld [vmem:[%s4417_s1 + $0x4f0] sm:$0xff]  ;;  %v2567_v35 = vpack.c.bf16 %v192_v27, %v191_v26 }
  0x16   :  { %820 = vperm.xlu0 %2893, %v2952_v0   ;;  %2522 = vmatpush3.bf16.msra.mxu0 %v2521_v61  ;;  %v365_v34 = vld [vmem:[%s4417_s1 + $0x4f8] sm:$0xff]  ;;  %v175_v36 = vld [vmem:[%s4417_s1 + $0x70] sm:$0xff]  ;;  %v2533_v38 = vpack.c.bf16 %v347_v31, %v346_v30  ;;  %v241_v39 = vld [vmem:[%s4417_s1 + $0x280] sm:$0xff] }
  0x17   :  { %2524 = vmatprep.subr.bf16.mxu0 %v2523_v4  ;;  %v176_v37 = vld [vmem:[%s4417_s1 + $0x78] sm:$0xff]  ;;  %v242_v40 = vld [vmem:[%s4417_s1 + $0x288] sm:$0xff]  ;;  %v2535_v41 = vpack.c.bf16 %v365_v34, %v364_v33  ;;  %v348_v42 = vld [vmem:[%s4417_s1 + $0x470] sm:$0xff] }
  0x18   :  { %2891 = vset.pattern.permute.xlu1 %v2923_v21  ;;  %2558 = vmatpush3.bf16.msra.mxu1 %v2557_v7  ;;  %v174_v21 = vld [vmem:[%s4417_s1 + $0x68] sm:$0xff]  ;;  %v349_v43 = vld [vmem:[%s4417_s1 + $0x478] sm:$0xff]  ;;  %v2569_v45 = vpack.c.bf16 %v176_v37, %v175_v36  ;;  %v209_v46 = vld [vmem:[%s4417_s1 + $0x180] sm:$0xff]  ;;  %v2603_v48 = vpack.c.bf16 %v242_v40, %v241_v39 }
  0x19   :  { %302 = vperm.xlu1 %2891, %v3093_v57   ;;  %2560 = vmatprep.subr.bf16.mxu1 %v2559_v10  ;;  %v2565_v32 = vpack.c.bf16 %v174_v21, %v173_v24  ;;  %v210_v47 = vld [vmem:[%s4417_s1 + $0x188] sm:$0xff]  ;;  %v2537_v49 = vpack.c.bf16 %v349_v43, %v348_v42 }
  0x1a   :  { %829 = vperm.xlu0 %2893, %v3093_v57   ;;  %2526 = vmatpush3.bf16.msra.mxu0 %v2525_v13  ;;  %v2571_v50 = vpack.c.bf16 %v210_v47, %v209_v46 }
  0x1b   :  { %2528 = vmatprep.subr.bf16.mxu0 %v2527_v16 }
  0x1c   :  { %2562 = vmatpush3.bf16.msra.mxu1 %v2561_v19 }
  0x1d   :  { %2892 = vset.pattern.permute.xlu1 %v2924_v9  ;;  %2564 = vmatprep.subr.bf16.mxu1 %v2563_v23 }
  0x1e   :  { %817 = vperm.xlu1 %2892, %v2957_v1   ;;  %2530 = vmatpush3.bf16.msra.mxu0 %v2529_v25 }
  0x1f   :  { %2532 = vmatprep.subr.bf16.mxu0 %v2531_v29  ;;  %2895 = vset.pattern.permute.xlu0 %v2925_v44 }
  0x20   :  { %2566 = vmatpush3.bf16.msra.mxu1 %v2565_v32  ;;  %1448 = vperm.xlu0 %2895, %v2952_v0  }
  0x21   :  { %2568 = vmatprep.subr.bf16.mxu1 %v2567_v35 }
  0x22   :  { %823 = vperm.xlu1 %2892, %v2964_v3   ;;  %2534 = vmatpush3.bf16.msra.mxu0 %v2533_v38 }
  0x23   :  { %2536 = vmatprep.subr.bf16.mxu0 %v2535_v41 }
  0x24   :  { %2570 = vmatpush3.bf16.msra.mxu1 %v2569_v45  ;;  %1457 = vperm.xlu0 %2895, %v3093_v57  }
  0x25   :  { %2604 = vmatprep.subr.bf16.mxu1 %v2603_v48 }
  0x26   :  { %826 = vperm.xlu1 %2892, %v3025_v28   ;;  %2538 = vmatpush3.bf16.msra.mxu0 %v2537_v49 }
  0x27   :  { %2572 = vmatprep.subr.bf16.mxu0 %v2571_v50 }
  0x28   :  { %2897 = vset.pattern.permute.xlu0 %v2926_v51 }
  0x29   :  { %1586 = vperm.xlu0 %2897, %v2957_v1  }
  0x2a   :  { %2894 = vset.pattern.permute.xlu1 %v2925_v44 }
  0x2b   :  { %1445 = vperm.xlu1 %2894, %v2957_v1  }
  0x2d   :  { %1598 = vperm.xlu0 %2897, %v3093_v57  }
  0x2f   :  { %1451 = vperm.xlu1 %2894, %v2964_v3  }
  0x33   :  { %1454 = vperm.xlu1 %2894, %v3025_v28  }
  0x37   :  { %2896 = vset.pattern.permute.xlu1 %v2926_v51 }
  0x38   :  { %1592 = vperm.xlu1 %2896, %v2964_v3  }
  0x3c   :  { %1595 = vperm.xlu1 %2896, %v3025_v28  }
  0x3d   :  { %7 = vsyncpa [#allocation3], 0  ;;  %v12_v52 = vlaneseq  ;;  %v225_v1 = vld [vmem:[%s4417_s1 + $0x200] sm:$0xff]  ;;  %v226_v55 = vld [vmem:[%s4417_s1 + $0x208] sm:$0xff]  ;;  %v2927_v62 = vmov 1.0  }
  0x3e   :  { %v243_v3 = vld [vmem:[%s4417_s1 + $0x290] sm:$0xff]  ;;  %v2605_v57 = vpack.c.bf16 %v226_v55, %v225_v1  ;;  %v228_v60 = vld [vmem:[%s4417_s1 + $0x218] sm:$0xff]  ;;  %v193_v61 = vld [vmem:[%s4417_s1 + $0x100] sm:$0xff] }
  0x3f   :  { %v3211_v53 = vand.u32 127, %v12_v52  ;;  %v227_v59 = vld [vmem:[%s4417_s1 + $0x210] sm:$0xff]  ;;  %v194_v63 = vld [vmem:[%s4417_s1 + $0x108] sm:$0xff]  ;;  %v245_v4 = vld [vmem:[%s4417_s1 + $0x2a0] sm:$0xff] }
  0x40   :  { %1589 = vperm.xlu1 %2896, %v2952_v0   ;;  %v244_v0 = vld [vmem:[%s4417_s1 + $0x298] sm:$0xff]  ;;  %v246_v5 = vld [vmem:[%s4417_s1 + $0x2a8] sm:$0xff]  ;;  %v211_v6 = vld [vmem:[%s4417_s1 + $0x190] sm:$0xff]  ;;  %v2609_v2 = vpack.c.bf16 %v228_v60, %v227_v59  ;;  %v2573_v10 = vpack.c.bf16 %v194_v63, %v193_v61 }
  0x41   :  { %v3214_v54 = vadd.s32 128, %v3211_v53  ;;  %v2607_v58 = vpack.c.bf16 %v244_v0, %v243_v3  ;;  %v212_v7 = vld [vmem:[%s4417_s1 + $0x198] sm:$0xff]  ;;  %v2611_v11 = vpack.c.bf16 %v246_v5, %v245_v4  ;;  %v229_v12 = vld [vmem:[%s4417_s1 + $0x220] sm:$0xff]  ;;  %v230_v13 = vld [vmem:[%s4417_s1 + $0x228] sm:$0xff]  ;;  %v3391_v0 = vadd.s32 640, %v3211_v53 }
  0x42   :  { %v195_v14 = vld [vmem:[%s4417_s1 + $0x110] sm:$0xff]  ;;  %v2575_v15 = vpack.c.bf16 %v212_v7, %v211_v6  ;;  %v196_v16 = vld [vmem:[%s4417_s1 + $0x118] sm:$0xff]  ;;  %v213_v19 = vld [vmem:[%s4417_s1 + $0x1a0] sm:$0xff]  ;;  %v2613_v22 = vpack.c.bf16 %v230_v13, %v229_v12  ;;  %v3439_v13 = vadd.s32 384, %v3211_v53 }
  0x43   :  { %v247_v17 = vld [vmem:[%s4417_s1 + $0x2b0] sm:$0xff]  ;;  %v248_v18 = vld [vmem:[%s4417_s1 + $0x2b8] sm:$0xff]  ;;  %v214_v20 = vld [vmem:[%s4417_s1 + $0x1a8] sm:$0xff]  ;;  %v2577_v24 = vpack.c.bf16 %v196_v16, %v195_v14 }
  0x44   :  { %v2615_v21 = vpack.c.bf16 %v248_v18, %v247_v17  ;;  %v231_v25 = vld [vmem:[%s4417_s1 + $0x230] sm:$0xff]  ;;  %v232_v26 = vld [vmem:[%s4417_s1 + $0x238] sm:$0xff]  ;;  %v197_v27 = vld [vmem:[%s4417_s1 + $0x120] sm:$0xff]  ;;  %v2579_v30 = vpack.c.bf16 %v214_v20, %v213_v19 }
  0x45   :  { %v198_v31 = vld [vmem:[%s4417_s1 + $0x128] sm:$0xff]  ;;  %v249_v32 = vld [vmem:[%s4417_s1 + $0x2c0] sm:$0xff]  ;;  %v215_v34 = vld [vmem:[%s4417_s1 + $0x1b0] sm:$0xff]  ;;  %v2617_v36 = vpack.c.bf16 %v232_v26, %v231_v25 }
  0x46   :  { %v250_v33 = vld [vmem:[%s4417_s1 + $0x2c8] sm:$0xff]  ;;  %v216_v35 = vld [vmem:[%s4417_s1 + $0x1b8] sm:$0xff]  ;;  %v2581_v38 = vpack.c.bf16 %v198_v31, %v197_v27  ;;  %v233_v40 = vld [vmem:[%s4417_s1 + $0x240] sm:$0xff] }
  0x47   :  { %v2619_v39 = vpack.c.bf16 %v250_v33, %v249_v32  ;;  %v234_v41 = vld [vmem:[%s4417_s1 + $0x248] sm:$0xff]  ;;  %v2583_v42 = vpack.c.bf16 %v216_v35, %v215_v34  ;;  %v199_v43 = vld [vmem:[%s4417_s1 + $0x130] sm:$0xff]  ;;  %v200_v44 = vld [vmem:[%s4417_s1 + $0x138] sm:$0xff] }
  0x48   :  { %v251_v46 = vld [vmem:[%s4417_s1 + $0x2d0] sm:$0xff]  ;;  %v252_v47 = vld [vmem:[%s4417_s1 + $0x2d8] sm:$0xff]  ;;  %v2621_v48 = vpack.c.bf16 %v234_v41, %v233_v40  ;;  %v217_v49 = vld [vmem:[%s4417_s1 + $0x1c0] sm:$0xff]  ;;  %v2585_v51 = vpack.c.bf16 %v200_v44, %v199_v43  ;;  %v3512_v44 = vadd.s32 512, %v3211_v53 }
  0x49   :  { %v218_v50 = vld [vmem:[%s4417_s1 + $0x1c8] sm:$0xff]  ;;  %v235_v52 = vld [vmem:[%s4417_s1 + $0x250] sm:$0xff]  ;;  %v236_v1 = vld [vmem:[%s4417_s1 + $0x258] sm:$0xff]  ;;  %v2623_v3 = vpack.c.bf16 %v252_v47, %v251_v46 }
  0x4a   :  { %v2587_v59 = vpack.c.bf16 %v218_v50, %v217_v49  ;;  %v253_v60 = vld [vmem:[%s4417_s1 + $0x2e0] sm:$0xff]  ;;  %v254_v61 = vld [vmem:[%s4417_s1 + $0x2e8] sm:$0xff]  ;;  %v2625_v63 = vpack.c.bf16 %v236_v1, %v235_v52  ;;  %v219_v4 = vld [vmem:[%s4417_s1 + $0x1d0] sm:$0xff] }
  0x4b   :  { %v220_v5 = vld [vmem:[%s4417_s1 + $0x1d8] sm:$0xff]  ;;  %v237_v7 = vld [vmem:[%s4417_s1 + $0x260] sm:$0xff]  ;;  %v2627_v12 = vpack.c.bf16 %v254_v61, %v253_v60  ;;  %v239_v25 = vld [vmem:[%s4417_s1 + $0x270] sm:$0xff]  ;;  %v3552_v61 = vadd.s32 256, %v3211_v53 }
  0x4c   :  { %v204_v14 = vld [vmem:[%s4417_s1 + $0x158] sm:$0xff]  ;;  %v2591_v19 = vpack.c.bf16 %v220_v5, %v219_v4  ;;  %v221_v20 = vld [vmem:[%s4417_s1 + $0x1e0] sm:$0xff]  ;;  %v206_v31 = vld [vmem:[%s4417_s1 + $0x168] sm:$0xff] }
  0x4d   :  { %v256_v16 = vld [vmem:[%s4417_s1 + $0x2f8] sm:$0xff]  ;;  %v205_v27 = vld [vmem:[%s4417_s1 + $0x160] sm:$0xff]  ;;  %v968_v33 = vld [vmem:[%s4417_s1 + $0x588] sm:$0xff] }
  0x4e   :  { %v240_v26 = vld [vmem:[%s4417_s1 + $0x278] sm:$0xff]  ;;  %v967_v32 = vld [vmem:[%s4417_s1 + $0x580] sm:$0xff]  ;;  %v223_v35 = vld [vmem:[%s4417_s1 + $0x1f0] sm:$0xff] }
  0x4f   :  { %v2667_v40 = vpack.c.bf16 %v968_v33, %v967_v32  ;;  %v951_v41 = vld [vmem:[%s4417_s1 + $0x500] sm:$0xff]  ;;  %v207_v43 = vld [vmem:[%s4417_s1 + $0x170] sm:$0xff]  ;;  %v208_v46 = vld [vmem:[%s4417_s1 + $0x178] sm:$0xff] }
  0x50   :  { %v969_v47 = vld [vmem:[%s4417_s1 + $0x590] sm:$0xff]  ;;  %v273_v49 = vld [vmem:[%s4417_s1 + $0x380] sm:$0xff]  ;;  %v274_v50 = vld [vmem:[%s4417_s1 + $0x388] sm:$0xff]  ;;  %v2601_v1 = vpack.c.bf16 %v208_v46, %v207_v43 }
  0x51   :  { %v257_v60 = vld [vmem:[%s4417_s1 + $0x300] sm:$0xff]  ;;  %v972_v5 = vld [vmem:[%s4417_s1 + $0x5a8] sm:$0xff] }
  0x52   :  { %v971_v4 = vld [vmem:[%s4417_s1 + $0x5a0] sm:$0xff]  ;;  %v960_v46 = vld [vmem:[%s4417_s1 + $0x548] sm:$0xff] }
  0x53   :  { %v261_v32 = vld [vmem:[%s4417_s1 + $0x320] sm:$0xff] }
  0x81   :  { %v3228_v28 = vpop.permute.xlu0 %27  ;;  %v3230_v56 = vpop.permute.xlu1 %30 }
  0x82   :  { %vm42_vm0 = vcmp.eq.s32.totalorder %v3228_v28, %v3214_v54  ;;  %vm41_vm1 = vcmp.eq.s32.totalorder %v3228_v28, %v3211_v53  ;;  %vm50_vm2 = vcmp.eq.s32.totalorder %v3230_v56, %v3214_v54  ;;  %vm49_vm3 = vcmp.eq.s32.totalorder %v3230_v56, %v3211_v53 }
  0x83   :  { %1808 = vmatprep.mubr.msk.f32.mxu1 %vm42_vm0, %v2927_v62 }
  0x84   :  { %1809 = vmatmul.mubr.msk.f32.vlgmr.msra.gmra.mrb[0].mxu1 %vm41_vm1, %v2927_v62 }
  0x85   :  { %2606 = vmatpush3.bf16.msra.mxu1 %v2605_v57  ;;  %v3264_v8 = vpop.permute.xlu1 %33  ;;  %1810 = vmatprep.mubr.msk.f32.mxu1 %vm50_vm2, %v2927_v62  ;;  %v201_v57 = vld [vmem:[%s4417_s1 + $0x140] sm:$0xff]  ;;  %vm46_vm2 = vcmp.eq.s32.totalorder %v3228_v28, %v3391_v0 }
  0x86   :  { %v291_v9 = vpop.permute.xlu0 %290  ;;  %2608 = vmatprep.subr.bf16.mxu1 %v2607_v58  ;;  %vm58_vm6 = vcmp.eq.s32.totalorder %v3264_v8, %v3214_v54  ;;  %vm57_vm7 = vcmp.eq.s32.totalorder %v3264_v8, %v3211_v53  ;;  %v202_v58 = vld [vmem:[%s4417_s1 + $0x148] sm:$0xff] }
  0x87   :  { %vm304_vm4 = vcmp.eq.s32.totalorder %v291_v9, %v3211_v53  ;;  %vm305_vm5 = vcmp.eq.s32.totalorder %v291_v9, %v3214_v54  ;;  %v2589_v6 = vpack.c.bf16 %v202_v58, %v201_v57  ;;  %v203_v9 = vld [vmem:[%s4417_s1 + $0x150] sm:$0xff]  ;;  %v2635_v57 = vpack.c.bf16 %v274_v50, %v273_v49  ;;  %v264_v49 = vld [vmem:[%s4417_s1 + $0x338] sm:$0xff] }
  0x88   :  { %1798 = vmatprep.mubr.msk.f32.mxu0 %vm305_vm5, %v2927_v62  ;;  %1811 = vmatmul.mubr.msk.f32.gmra.mrb[2].mxu1 %vm49_vm3, %v2927_v62  ;;  %v953_v58 = vld [vmem:[%s4417_s1 + $0x510] sm:$0xff] }
  0x89   :  { %2610 = vmatpush3.bf16.msra.mxu1 %v2609_v2  ;;  %1799 = vmatmul.mubr.msk.f32.vlgmr.msra.gmra.mrb[0].mxu0 %vm304_vm4, %v2927_v62  ;;  %v238_v2 = vld [vmem:[%s4417_s1 + $0x268] sm:$0xff]  ;;  %v977_v50 = vld [vmem:[%s4417_s1 + $0x5d0] sm:$0xff] }
  0x8a   :  { %2574 = vmatpush3.bf16.msra.mxu0 %v2573_v10  ;;  %v294_v23 = vpop.permute.xlu1 %293  ;;  %1812 = vmatprep.mubr.msk.f32.mxu1 %vm58_vm6, %v2927_v62  ;;  %v3428_v10 = vadd.s32 896, %v3211_v53 }
  0x8b   :  { %vm306_vm8 = vcmp.eq.s32.totalorder %v294_v23, %v3211_v53  ;;  %vm307_vm9 = vcmp.eq.s32.totalorder %v294_v23, %v3214_v54  ;;  %2612 = vmatprep.subr.bf16.mxu1 %v2611_v11  ;;  %2576 = vmatprep.subr.bf16.mxu0 %v2575_v15  ;;  %v3317_v29 = vpop.permute.xlu0 %36  ;;  %v3431_v11 = vadd.s32 768, %v3211_v53  ;;  %v255_v15 = vld [vmem:[%s4417_s1 + $0x2f0] sm:$0xff]  ;;  %v2629_v23 = vpack.c.bf16 %v238_v2, %v237_v7  ;;  %v276_v7 = vld [vmem:[%s4417_s1 + $0x398] sm:$0xff] }
  0x8c   :  { %1800 = vmatprep.mubr.msk.f32.mxu0 %vm307_vm9, %v2927_v62  ;;  %1813 = vmatmul.mubr.msk.f32.gmra.mrb[4].mxu1 %vm57_vm7, %v2927_v62  ;;  %vm66_vm10 = vcmp.eq.s32.totalorder %v3317_v29, %v3214_v54  ;;  %vm65_vm11 = vcmp.eq.s32.totalorder %v3317_v29, %v3211_v53  ;;  %vm44_vm7 = vcmp.eq.s32.totalorder %v3228_v28, %v3439_v13 }
  0x8d   :  { %2614 = vmatpush3.bf16.msra.mxu1 %v2613_v22  ;;  %1801 = vmatmul.mubr.msk.f32.gmra.mrb[2].mxu0 %vm306_vm8, %v2927_v62  ;;  %v222_v22 = vld [vmem:[%s4417_s1 + $0x1e8] sm:$0xff] }
  0x8e   :  { %2578 = vmatpush3.bf16.msra.mxu0 %v2577_v24  ;;  %v297_v37 = vpop.permute.xlu1 %296  ;;  %2616 = vmatprep.subr.bf16.mxu1 %v2615_v21  ;;  %v2593_v24 = vpack.c.bf16 %v204_v14, %v203_v9  ;;  %v2631_v21 = vpack.c.bf16 %v256_v16, %v255_v15  ;;  %v2675_v14 = vpack.c.bf16 %v972_v5, %v971_v4  ;;  %v955_v15 = vld [vmem:[%s4417_s1 + $0x520] sm:$0xff]  ;;  %v956_v16 = vld [vmem:[%s4417_s1 + $0x528] sm:$0xff] }
  0x8f   :  { %vm308_vm12 = vcmp.eq.s32.totalorder %v297_v37, %v3211_v53  ;;  %vm309_vm13 = vcmp.eq.s32.totalorder %v297_v37, %v3214_v54  ;;  %2580 = vmatprep.subr.bf16.mxu0 %v2579_v30  ;;  %1814 = vmatprep.mubr.msk.f32.mxu1 %vm66_vm10, %v2927_v62  ;;  %v2595_v30 = vpack.c.bf16 %v222_v22, %v221_v20  ;;  %v260_v20 = vld [vmem:[%s4417_s1 + $0x318] sm:$0xff]  ;;  %v973_v22 = vld [vmem:[%s4417_s1 + $0x5b0] sm:$0xff]  ;;  %v265_v4 = vld [vmem:[%s4417_s1 + $0x340] sm:$0xff] }
  0x90   :  { %1802 = vmatprep.mubr.msk.f32.mxu0 %vm309_vm13, %v2927_v62  ;;  %1815 = vmatmul.mubr.msk.f32.gmra.mrb[6].mxu1 %vm65_vm11, %v2927_v62  ;;  %v300_v45 = vpop.permute.xlu0 %299  ;;  %v2633_v37 = vpack.c.bf16 %v240_v26, %v239_v25  ;;  %v2677_v25 = vpack.c.bf16 %v956_v16, %v955_v15 }
  0x91   :  { %2618 = vmatpush3.bf16.msra.mxu1 %v2617_v36  ;;  %1803 = vmatmul.mubr.msk.f32.gmra.mrb[4].mxu0 %vm308_vm12, %v2927_v62  ;;  %vm311_vm14 = vcmp.eq.s32.totalorder %v300_v45, %v3214_v54  ;;  %vm310_vm15 = vcmp.eq.s32.totalorder %v300_v45, %v3211_v53  ;;  %v224_v36 = vld [vmem:[%s4417_s1 + $0x1f8] sm:$0xff]  ;;  %vm45_vm12 = vcmp.eq.s32.totalorder %v3228_v28, %v3512_v44 }
  0x92   :  { %2582 = vmatpush3.bf16.msra.mxu0 %v2581_v38  ;;  %2620 = vmatprep.subr.bf16.mxu1 %v2619_v39  ;;  %v2597_v39 = vpack.c.bf16 %v206_v31, %v205_v27  ;;  %v2599_v45 = vpack.c.bf16 %v224_v36, %v223_v35  ;;  %v958_v31 = vld [vmem:[%s4417_s1 + $0x538] sm:$0xff]  ;;  %v262_v35 = vld [vmem:[%s4417_s1 + $0x328] sm:$0xff]  ;;  %v975_v36 = vld [vmem:[%s4417_s1 + $0x5c0] sm:$0xff] }
  0x93   :  { %v3387_v55 = vpop.permute.xlu1 %39  ;;  %2584 = vmatprep.subr.bf16.mxu0 %v2583_v42  ;;  %1804 = vmatprep.mubr.msk.f32.mxu0 %vm311_vm14, %v2927_v62  ;;  %v952_v42 = vld [vmem:[%s4417_s1 + $0x508] sm:$0xff]  ;;  %vm54_vm14 = vcmp.eq.s32.totalorder %v3230_v56, %v3391_v0 }
  0x94   :  { %vm74_vm0 = vcmp.eq.s32.totalorder %v3387_v55, %v3214_v54  ;;  %vm73_vm1 = vcmp.eq.s32.totalorder %v3387_v55, %v3211_v53 }
  0x95   :  { %2622 = vmatpush3.bf16.msra.mxu1 %v2621_v48  ;;  %1816 = vmatprep.mubr.msk.f32.mxu1 %vm74_vm0, %v2927_v62  ;;  %v3450_v17 = vpop.permute.xlu0 %820  ;;  %v970_v48 = vld [vmem:[%s4417_s1 + $0x598] sm:$0xff]  ;;  %vm53_vm0 = vcmp.eq.s32.totalorder %v3230_v56, %v3512_v44 }
  0x96   :  { %2586 = vmatpush3.bf16.msra.mxu0 %v2585_v51  ;;  %1817 = vmatmul.mubr.msk.f32.gmra.mrb[8].mxu1 %vm73_vm1, %v2927_v62  ;;  %vm846_vm3 = vcmp.eq.s32.totalorder %v3450_v17, %v3428_v10  ;;  %vm845_vm4 = vcmp.eq.s32.totalorder %v3450_v17, %v3431_v11  ;;  %v2669_v51 = vpack.c.bf16 %v952_v42, %v951_v41 }
  0x97   :  { %1805 = vmatmul.mubr.msk.f32.gmra.mrb[6].mxu0 %vm310_vm15, %v2927_v62  ;;  %2624 = vmatprep.subr.bf16.mxu1 %v2623_v3  ;;  %v2671_v3 = vpack.c.bf16 %v970_v48, %v969_v47  ;;  %v2645_v42 = vpack.c.bf16 %v262_v35, %v261_v32  ;;  %v263_v47 = vld [vmem:[%s4417_s1 + $0x330] sm:$0xff]  ;;  %v966_v35 = vld [vmem:[%s4417_s1 + $0x578] sm:$0xff] }
  0x98   :  { %1828 = vmatprep.mubr.msk.f32.mxu1 %vm46_vm2, %v2927_v62  ;;  %v303_v18 = vpop.permute.xlu1 %302  ;;  %2588 = vmatprep.subr.bf16.mxu0 %v2587_v59  ;;  %v954_v59 = vld [vmem:[%s4417_s1 + $0x518] sm:$0xff]  ;;  %vm43_vm2 = vcmp.eq.s32.totalorder %v3228_v28, %v3552_v61 }
  0x99   :  { %vm312_vm5 = vcmp.eq.s32.totalorder %v303_v18, %v3211_v53  ;;  %vm313_vm6 = vcmp.eq.s32.totalorder %v303_v18, %v3214_v54  ;;  %2626 = vmatpush3.bf16.msra.mxu1 %v2625_v63  ;;  %v3487_v34 = vpop.permute.xlu0 %829  ;;  %v258_v63 = vld [vmem:[%s4417_s1 + $0x308] sm:$0xff]  ;;  %v2673_v9 = vpack.c.bf16 %v954_v59, %v953_v58  ;;  %v259_v18 = vld [vmem:[%s4417_s1 + $0x310] sm:$0xff]  ;;  %v2649_v58 = vpack.c.bf16 %v264_v49, %v263_v47 }
  0x9a   :  { %2590 = vmatpush3.bf16.msra.mxu0 %v2589_v6  ;;  %1806 = vmatprep.mubr.msk.f32.mxu0 %vm313_vm6, %v2927_v62  ;;  %vm870_vm8 = vcmp.eq.s32.totalorder %v3487_v34, %v3428_v10  ;;  %vm869_vm9 = vcmp.eq.s32.totalorder %v3487_v34, %v3431_v11  ;;  %v275_v6 = vld [vmem:[%s4417_s1 + $0x390] sm:$0xff]  ;;  %v2641_v26 = vpack.c.bf16 %v260_v20, %v259_v18  ;;  %v964_v20 = vld [vmem:[%s4417_s1 + $0x568] sm:$0xff] }
  0x9b   :  { %1807 = vmatmul.mubr.msk.f32.gmra.mrb[8].mxu0 %vm312_vm5, %v2927_v62  ;;  %2628 = vmatprep.subr.bf16.mxu1 %v2627_v12  ;;  %v2637_v12 = vpack.c.bf16 %v258_v63, %v257_v60  ;;  %vm62_vm5 = vcmp.eq.s32.totalorder %v3264_v8, %v3391_v0  ;;  %v961_v60 = vld [vmem:[%s4417_s1 + $0x550] sm:$0xff]  ;;  %v962_v63 = vld [vmem:[%s4417_s1 + $0x558] sm:$0xff]  ;;  %v1016_v49 = vld [vmem:[%s4417_s1 + $0x708] sm:$0xff] }
  0x9c   :  { %2592 = vmatprep.subr.bf16.mxu0 %v2591_v19  ;;  %1818 = vmatprep.mubr.msk.f32.mxu0 %vm44_vm7, %v2927_v62  ;;  %v2639_v19 = vpack.c.bf16 %v276_v7, %v275_v6  ;;  %vm52_vm7 = vcmp.eq.s32.totalorder %v3230_v56, %v3439_v13  ;;  %v266_v6 = vld [vmem:[%s4417_s1 + $0x348] sm:$0xff]  ;;  %v979_v7 = vld [vmem:[%s4417_s1 + $0x5e0] sm:$0xff]  ;;  %v2689_v15 = vpack.c.bf16 %v962_v63, %v961_v60 }
  0x9d   :  { %2630 = vmatpush3.bf16.msra.mxu1 %v2629_v23  ;;  %v3500_v38 = vpop.permute.xlu1 %817  ;;  %v974_v23 = vld [vmem:[%s4417_s1 + $0x5b8] sm:$0xff]  ;;  %v2653_v16 = vpack.c.bf16 %v266_v6, %v265_v4  ;;  %v1017_v6 = vld [vmem:[%s4417_s1 + $0x710] sm:$0xff] }
  0x9e   :  { %2594 = vmatpush3.bf16.msra.mxu0 %v2593_v24  ;;  %2632 = vmatprep.subr.bf16.mxu1 %v2631_v21  ;;  %vm838_vm10 = vcmp.eq.s32.totalorder %v3500_v38, %v3428_v10  ;;  %vm837_vm11 = vcmp.eq.s32.totalorder %v3500_v38, %v3431_v11  ;;  %v277_v24 = vld [vmem:[%s4417_s1 + $0x3a0] sm:$0xff]  ;;  %v278_v21 = vld [vmem:[%s4417_s1 + $0x3a8] sm:$0xff]  ;;  %v2679_v27 = vpack.c.bf16 %v974_v23, %v973_v22  ;;  %v267_v22 = vld [vmem:[%s4417_s1 + $0x350] sm:$0xff] }
  0x9f   :  { %2596 = vmatprep.subr.bf16.mxu0 %v2595_v30  ;;  %v957_v30 = vld [vmem:[%s4417_s1 + $0x530] sm:$0xff]  ;;  %v2643_v33 = vpack.c.bf16 %v278_v21, %v277_v24  ;;  %v268_v24 = vld [vmem:[%s4417_s1 + $0x358] sm:$0xff] }
  0xa0   :  { %v2681_v41 = vpack.c.bf16 %v958_v31, %v957_v30  ;;  %v981_v21 = vld [vmem:[%s4417_s1 + $0x5f0] sm:$0xff]  ;;  %v2657_v31 = vpack.c.bf16 %v268_v24, %v267_v22  ;;  %v1020_v24 = vld [vmem:[%s4417_s1 + $0x728] sm:$0xff] }
  0xa1   :  { %2634 = vmatpush3.bf16.msra.mxu1 %v2633_v37  ;;  %v3533_v52 = vpop.permute.xlu1 %823  ;;  %v976_v37 = vld [vmem:[%s4417_s1 + $0x5c8] sm:$0xff] }
  0xa2   :  { %2598 = vmatpush3.bf16.msra.mxu0 %v2597_v39  ;;  %2668 = vmatprep.subr.bf16.mxu1 %v2667_v40  ;;  %vm854_vm13 = vcmp.eq.s32.totalorder %v3533_v52, %v3428_v10  ;;  %vm853_vm15 = vcmp.eq.s32.totalorder %v3533_v52, %v3431_v11  ;;  %v279_v39 = vld [vmem:[%s4417_s1 + $0x3b0] sm:$0xff]  ;;  %v280_v40 = vld [vmem:[%s4417_s1 + $0x3b8] sm:$0xff]  ;;  %v2683_v43 = vpack.c.bf16 %v976_v37, %v975_v36  ;;  %v269_v36 = vld [vmem:[%s4417_s1 + $0x360] sm:$0xff] }
  0xa3   :  { %2600 = vmatprep.subr.bf16.mxu0 %v2599_v45  ;;  %v959_v45 = vld [vmem:[%s4417_s1 + $0x540] sm:$0xff]  ;;  %v2647_v48 = vpack.c.bf16 %v280_v40, %v279_v39  ;;  %v270_v39 = vld [vmem:[%s4417_s1 + $0x368] sm:$0xff] }
  0xa4   :  { %1829 = vmatmul.mubr.msk.f32.vlgmr.msra.gmra.mrb[10].mxu1 %vm45_vm12, %v2927_v62  ;;  %vm61_vm12 = vcmp.eq.s32.totalorder %v3264_v8, %v3512_v44  ;;  %v1031_v40 = vld [vmem:[%s4417_s1 + $0x780] sm:$0xff] }
  0xa5   :  { %1830 = vmatprep.mubr.msk.f32.mxu1 %vm54_vm14, %v2927_v62  ;;  %2670 = vmatpush3.bf16.msra.mxu1 %v2669_v51  ;;  %v3572_v2 = vpop.permute.xlu1 %826  ;;  %vm51_vm14 = vcmp.eq.s32.totalorder %v3230_v56, %v3552_v61  ;;  %v978_v51 = vld [vmem:[%s4417_s1 + $0x5d8] sm:$0xff] }
  0xa6   :  { %2602 = vmatpush3.bf16.msra.mxu0 %v2601_v1  ;;  %2672 = vmatprep.subr.bf16.mxu1 %v2671_v3  ;;  %vm862_vm1 = vcmp.eq.s32.totalorder %v3572_v2, %v3428_v10  ;;  %vm861_vm6 = vcmp.eq.s32.totalorder %v3572_v2, %v3431_v11  ;;  %v281_v1 = vld [vmem:[%s4417_s1 + $0x3c0] sm:$0xff]  ;;  %v282_v3 = vld [vmem:[%s4417_s1 + $0x3c8] sm:$0xff]  ;;  %v2687_v59 = vpack.c.bf16 %v978_v51, %v977_v50  ;;  %v271_v50 = vld [vmem:[%s4417_s1 + $0x370] sm:$0xff] }
  0xa7   :  { %2636 = vmatprep.subr.bf16.mxu0 %v2635_v57  ;;  %v2685_v57 = vpack.c.bf16 %v960_v46, %v959_v45  ;;  %v2651_v5 = vpack.c.bf16 %v282_v3, %v281_v1  ;;  %v2661_v46 = vpack.c.bf16 %v270_v39, %v269_v36  ;;  %v272_v1 = vld [vmem:[%s4417_s1 + $0x378] sm:$0xff]  ;;  %v1033_v3 = vld [vmem:[%s4417_s1 + $0x790] sm:$0xff]  ;;  %v987_v39 = vld [vmem:[%s4417_s1 + $0x620] sm:$0xff] }
  0xa8   :  { %1831 = vmatmul.mubr.msk.f32.gmra.mrb[12].mxu1 %vm53_vm0, %v2927_v62  ;;  %vm70_vm0 = vcmp.eq.s32.totalorder %v3317_v29, %v3391_v0  ;;  %v2665_v63 = vpack.c.bf16 %v272_v1, %v271_v50  ;;  %v1021_v36 = vld [vmem:[%s4417_s1 + $0x730] sm:$0xff]  ;;  %v1024_v50 = vld [vmem:[%s4417_s1 + $0x748] sm:$0xff] }
  0xa9   :  { %1819 = vmatmul.mubr.msk.f32.vlgmr.msra.gmra.mrb[10].mxu0 %vm43_vm2, %v2927_v62  ;;  %1832 = vmatprep.mubr.msk.f32.mxu1 %vm62_vm5, %v2927_v62  ;;  %vm60_vm2 = vcmp.eq.s32.totalorder %v3264_v8, %v3439_v13  ;;  %vm69_vm5 = vcmp.eq.s32.totalorder %v3317_v29, %v3512_v44 }
  0xaa   :  { %2674 = vmatpush3.bf16.msra.mxu1 %v2673_v9  ;;  %1820 = vmatprep.mubr.msk.f32.mxu0 %vm52_vm7, %v2927_v62  ;;  %vm59_vm7 = vcmp.eq.s32.totalorder %v3264_v8, %v3552_v61  ;;  %v980_v9 = vld [vmem:[%s4417_s1 + $0x5e8] sm:$0xff] }
  0xab   :  { %2638 = vmatpush3.bf16.msra.mxu0 %v2637_v12  ;;  %2676 = vmatprep.subr.bf16.mxu1 %v2675_v14  ;;  %v283_v12 = vld [vmem:[%s4417_s1 + $0x3d0] sm:$0xff]  ;;  %v284_v14 = vld [vmem:[%s4417_s1 + $0x3d8] sm:$0xff]  ;;  %v2691_v18 = vpack.c.bf16 %v980_v9, %v979_v7  ;;  %v983_v9 = vld [vmem:[%s4417_s1 + $0x600] sm:$0xff] }
  0xac   :  { %1833 = vmatmul.mubr.msk.f32.gmra.mrb[14].mxu1 %vm61_vm12, %v2927_v62  ;;  %2640 = vmatprep.subr.bf16.mxu0 %v2639_v19  ;;  %vm78_vm12 = vcmp.eq.s32.totalorder %v3387_v55, %v3391_v0  ;;  %v963_v19 = vld [vmem:[%s4417_s1 + $0x560] sm:$0xff]  ;;  %v2655_v23 = vpack.c.bf16 %v284_v14, %v283_v12  ;;  %v1018_v7 = vld [vmem:[%s4417_s1 + $0x718] sm:$0xff]  ;;  %v984_v12 = vld [vmem:[%s4417_s1 + $0x608] sm:$0xff] }
  0xad   :  { %1821 = vmatmul.mubr.msk.f32.gmra.mrb[12].mxu0 %vm51_vm14, %v2927_v62  ;;  %1834 = vmatprep.mubr.msk.f32.mxu1 %vm70_vm0, %v2927_v62  ;;  %vm68_vm14 = vcmp.eq.s32.totalorder %v3317_v29, %v3439_v13  ;;  %vm832_vm0 = vcmp.eq.s32.totalorder %v3500_v38, %v3214_v54  ;;  %v2693_v30 = vpack.c.bf16 %v964_v20, %v963_v19  ;;  %v1035_v14 = vld [vmem:[%s4417_s1 + $0x7a0] sm:$0xff] }
  0xae   :  { %2678 = vmatpush3.bf16.msra.mxu1 %v2677_v25  ;;  %1822 = vmatprep.mubr.msk.f32.mxu0 %vm60_vm2, %v2927_v62  ;;  %vm77_vm2 = vcmp.eq.s32.totalorder %v3387_v55, %v3512_v44  ;;  %v982_v25 = vld [vmem:[%s4417_s1 + $0x5f8] sm:$0xff]  ;;  %v2737_v19 = vpack.c.bf16 %v1018_v7, %v1017_v6  ;;  %v2701_v20 = vpack.c.bf16 %v984_v12, %v983_v9  ;;  %v991_v6 = vld [vmem:[%s4417_s1 + $0x640] sm:$0xff]  ;;  %v992_v9 = vld [vmem:[%s4417_s1 + $0x648] sm:$0xff] }
  0xaf   :  { %2642 = vmatpush3.bf16.msra.mxu0 %v2641_v26  ;;  %2680 = vmatprep.subr.bf16.mxu1 %v2679_v27  ;;  %v285_v26 = vld [vmem:[%s4417_s1 + $0x3e0] sm:$0xff]  ;;  %v286_v27 = vld [vmem:[%s4417_s1 + $0x3e8] sm:$0xff]  ;;  %v2695_v32 = vpack.c.bf16 %v982_v25, %v981_v21  ;;  %v985_v21 = vld [vmem:[%s4417_s1 + $0x610] sm:$0xff] }
  0xb0   :  { %1835 = vmatmul.mubr.msk.f32.gmra.mrb[16].mxu1 %vm69_vm5, %v2927_v62  ;;  %2644 = vmatprep.subr.bf16.mxu0 %v2643_v33  ;;  %vm67_vm5 = vcmp.eq.s32.totalorder %v3317_v29, %v3552_v61  ;;  %v965_v33 = vld [vmem:[%s4417_s1 + $0x570] sm:$0xff]  ;;  %v2659_v37 = vpack.c.bf16 %v286_v27, %v285_v26  ;;  %v986_v26 = vld [vmem:[%s4417_s1 + $0x618] sm:$0xff]  ;;  %v1043_v12 = vld [vmem:[%s4417_s1 + $0x7e0] sm:$0xff] }
  0xb1   :  { %1823 = vmatmul.mubr.msk.f32.gmra.mrb[14].mxu0 %vm59_vm7, %v2927_v62  ;;  %1836 = vmatprep.mubr.msk.f32.mxu1 %vm78_vm12, %v2927_v62  ;;  %vm76_vm7 = vcmp.eq.s32.totalorder %v3387_v55, %v3439_v13  ;;  %vm75_vm12 = vcmp.eq.s32.totalorder %v3387_v55, %v3552_v61  ;;  %v2697_v45 = vpack.c.bf16 %v966_v35, %v965_v33  ;;  %v1037_v27 = vld [vmem:[%s4417_s1 + $0x7b0] sm:$0xff] }
  0xb2   :  { %2682 = vmatpush3.bf16.msra.mxu1 %v2681_v41  ;;  %1824 = vmatprep.mubr.msk.f32.mxu0 %vm68_vm14, %v2927_v62  ;;  %vm48_vm14 = vcmp.eq.s32.totalorder %v3228_v28, %v3428_v10  ;;  %v1032_v41 = vld [vmem:[%s4417_s1 + $0x788] sm:$0xff]  ;;  %v2705_v33 = vpack.c.bf16 %v986_v26, %v985_v21  ;;  %v994_v21 = vld [vmem:[%s4417_s1 + $0x658] sm:$0xff] }
  0xb3   :  { %2646 = vmatpush3.bf16.msra.mxu0 %v2645_v42  ;;  %2684 = vmatprep.subr.bf16.mxu1 %v2683_v43  ;;  %v287_v42 = vld [vmem:[%s4417_s1 + $0x3f0] sm:$0xff]  ;;  %v288_v43 = vld [vmem:[%s4417_s1 + $0x3f8] sm:$0xff]  ;;  %v2731_v47 = vpack.c.bf16 %v1032_v41, %v1031_v40  ;;  %v988_v41 = vld [vmem:[%s4417_s1 + $0x628] sm:$0xff] }
  0xb4   :  { %1837 = vmatmul.mubr.msk.f32.gmra.mrb[18].mxu1 %vm77_vm2, %v2927_v62  ;;  %2648 = vmatprep.subr.bf16.mxu0 %v2647_v48  ;;  %v1015_v48 = vld [vmem:[%s4417_s1 + $0x700] sm:$0xff]  ;;  %v2663_v51 = vpack.c.bf16 %v288_v43, %v287_v42  ;;  %vm840_vm2 = vcmp.eq.s32.totalorder %v3450_v17, %v3214_v54  ;;  %v1040_v43 = vld [vmem:[%s4417_s1 + $0x7c8] sm:$0xff]  ;;  %v1046_v26 = vld [vmem:[%s4417_s1 + $0x7f8] sm:$0xff] }
  0xb5   :  { %1825 = vmatmul.mubr.msk.f32.gmra.mrb[16].mxu0 %vm67_vm5, %v2927_v62  ;;  %1888 = vmatprep.mubr.msk.f32.mxu1 %vm832_vm0, %v2927_v62  ;;  %vm831_vm0 = vcmp.eq.s32.totalorder %v3500_v38, %v3211_v53  ;;  %v2733_v60 = vpack.c.bf16 %v1016_v49, %v1015_v48  ;;  %vm839_vm5 = vcmp.eq.s32.totalorder %v3450_v17, %v3211_v53  ;;  %v1039_v42 = vld [vmem:[%s4417_s1 + $0x7c0] sm:$0xff] }
  0xb6   :  { %2686 = vmatpush3.bf16.msra.mxu1 %v2685_v57  ;;  %1826 = vmatprep.mubr.msk.f32.mxu0 %vm76_vm7, %v2927_v62  ;;  %v1034_v57 = vld [vmem:[%s4417_s1 + $0x798] sm:$0xff]  ;;  %vm47_vm7 = vcmp.eq.s32.totalorder %v3228_v28, %v3431_v11  ;;  %v1003_v28 = vld [vmem:[%s4417_s1 + $0x6a0] sm:$0xff]  ;;  %v2747_v48 = vpack.c.bf16 %v1040_v43, %v1039_v42 }
  0xb7   :  { %2650 = vmatpush3.bf16.msra.mxu0 %v2649_v58  ;;  %2688 = vmatprep.subr.bf16.mxu1 %v2687_v59  ;;  %v999_v58 = vld [vmem:[%s4417_s1 + $0x680] sm:$0xff]  ;;  %v1000_v59 = vld [vmem:[%s4417_s1 + $0x688] sm:$0xff]  ;;  %v2735_v4 = vpack.c.bf16 %v1034_v57, %v1033_v3  ;;  %v990_v3 = vld [vmem:[%s4417_s1 + $0x638] sm:$0xff] }
  0xb8   :  { %2652 = vmatprep.subr.bf16.mxu0 %v2651_v5  ;;  %v2699_v5 = vpack.c.bf16 %v1000_v59, %v999_v58  ;;  %v1023_v49 = vld [vmem:[%s4417_s1 + $0x740] sm:$0xff]  ;;  %v1041_v57 = vld [vmem:[%s4417_s1 + $0x7d0] sm:$0xff]  ;;  %v1042_v58 = vld [vmem:[%s4417_s1 + $0x7d8] sm:$0xff] }
  0xb9   :  { %1827 = vmatmul.mubr.msk.f32.gmra.mrb[18].mxu0 %vm75_vm12, %v2927_v62  ;;  %vm848_vm12 = vcmp.eq.s32.totalorder %v3533_v52, %v3214_v54  ;;  %v1008_v59 = vld [vmem:[%s4417_s1 + $0x6c8] sm:$0xff]  ;;  %v1474_v43 = vld [vmem:[%s4417_s1 + $0x900] sm:$0xff] }
  0xba   :  { %2690 = vmatpush3.bf16.msra.mxu1 %v2689_v15  ;;  %1838 = vmatprep.mubr.msk.f32.mxu0 %vm48_vm14, %v2927_v62  ;;  %v1036_v15 = vld [vmem:[%s4417_s1 + $0x7a8] sm:$0xff]  ;;  %vm56_vm14 = vcmp.eq.s32.totalorder %v3230_v56, %v3428_v10 }
  0xbb   :  { %2654 = vmatpush3.bf16.msra.mxu0 %v2653_v16  ;;  %2692 = vmatprep.subr.bf16.mxu1 %v2691_v18  ;;  %v1001_v16 = vld [vmem:[%s4417_s1 + $0x690] sm:$0xff]  ;;  %v1002_v18 = vld [vmem:[%s4417_s1 + $0x698] sm:$0xff]  ;;  %v2739_v22 = vpack.c.bf16 %v1036_v15, %v1035_v14  ;;  %v1044_v14 = vld [vmem:[%s4417_s1 + $0x7e8] sm:$0xff] }
  0xbc   :  { %2656 = vmatprep.subr.bf16.mxu0 %v2655_v23  ;;  %v1019_v23 = vld [vmem:[%s4417_s1 + $0x720] sm:$0xff]  ;;  %v2703_v25 = vpack.c.bf16 %v1002_v18, %v1001_v16  ;;  %v1010_v15 = vld [vmem:[%s4417_s1 + $0x6d8] sm:$0xff]  ;;  %v2717_v18 = vpack.c.bf16 %v992_v9, %v991_v6  ;;  %v1479_v6 = vld [vmem:[%s4417_s1 + $0x928] sm:$0xff] }
  0xbd   :  { %v1049_v9 = vld [vmem:[%s4417_s1 + $0x810] sm:$0xff] }
  0xbe   :  { %2694 = vmatpush3.bf16.msra.mxu1 %v2693_v30  ;;  %v1038_v30 = vld [vmem:[%s4417_s1 + $0x7b8] sm:$0xff] }
  0xbf   :  { %2658 = vmatpush3.bf16.msra.mxu0 %v2657_v31  ;;  %2696 = vmatprep.subr.bf16.mxu1 %v2695_v32  ;;  %v1004_v31 = vld [vmem:[%s4417_s1 + $0x6a8] sm:$0xff]  ;;  %v2741_v32 = vpack.c.bf16 %v1020_v24, %v1019_v23  ;;  %v2743_v35 = vpack.c.bf16 %v1038_v30, %v1037_v27  ;;  %v993_v23 = vld [vmem:[%s4417_s1 + $0x650] sm:$0xff] }
  0xc0   :  { %2660 = vmatprep.subr.bf16.mxu0 %v2659_v37  ;;  %v1022_v37 = vld [vmem:[%s4417_s1 + $0x738] sm:$0xff]  ;;  %v2707_v40 = vpack.c.bf16 %v1004_v31, %v1003_v28  ;;  %v1012_v27 = vld [vmem:[%s4417_s1 + $0x6e8] sm:$0xff]  ;;  %v2721_v28 = vpack.c.bf16 %v994_v21, %v993_v23 }
  0xc1   :  { %v1052_v23 = vld [vmem:[%s4417_s1 + $0x828] sm:$0xff]  ;;  %v1070_v21 = vld [vmem:[%s4417_s1 + $0x8b8] sm:$0xff] }
  0xc2   :  { %2698 = vmatpush3.bf16.msra.mxu1 %v2697_v45  ;;  %v1006_v45 = vld [vmem:[%s4417_s1 + $0x6b8] sm:$0xff] }
  0xc3   :  { %2662 = vmatpush3.bf16.msra.mxu0 %v2661_v46  ;;  %2732 = vmatprep.subr.bf16.mxu1 %v2731_v47  ;;  %v2745_v46 = vpack.c.bf16 %v1022_v37, %v1021_v36  ;;  %v2709_v47 = vpack.c.bf16 %v988_v41, %v987_v39  ;;  %v995_v36 = vld [vmem:[%s4417_s1 + $0x660] sm:$0xff]  ;;  %v996_v37 = vld [vmem:[%s4417_s1 + $0x668] sm:$0xff]  ;;  %v1013_v39 = vld [vmem:[%s4417_s1 + $0x6f0] sm:$0xff] }
  0xc4   :  { %2664 = vmatprep.subr.bf16.mxu0 %v2663_v51  ;;  %v989_v51 = vld [vmem:[%s4417_s1 + $0x630] sm:$0xff]  ;;  %v2725_v42 = vpack.c.bf16 %v996_v37, %v995_v36  ;;  %v1485_v37 = vld [vmem:[%s4417_s1 + $0x958] sm:$0xff] }
  0xc5   :  { %1889 = vmatmul.mubr.msk.f32.vlgmr.msra.gmra.mrb[20].mxu1 %vm831_vm0, %v2927_v62  ;;  %vm847_vm0 = vcmp.eq.s32.totalorder %v3533_v52, %v3211_v53  ;;  %v1484_v36 = vld [vmem:[%s4417_s1 + $0x950] sm:$0xff] }
  0xc6   :  { %2734 = vmatpush3.bf16.msra.mxu1 %v2733_v60  ;;  %1890 = vmatprep.mubr.msk.f32.mxu1 %vm840_vm2, %v2927_v62  ;;  %vm55_vm2 = vcmp.eq.s32.totalorder %v3230_v56, %v3431_v11  ;;  %v1005_v56 = vld [vmem:[%s4417_s1 + $0x6b0] sm:$0xff]  ;;  %v2749_v60 = vpack.c.bf16 %v1024_v50, %v1023_v49  ;;  %v1064_v49 = vld [vmem:[%s4417_s1 + $0x888] sm:$0xff] }
  0xc7   :  { %2666 = vmatpush3.bf16.msra.mxu0 %v2665_v63  ;;  %2736 = vmatprep.subr.bf16.mxu1 %v2735_v4  ;;  %v2711_v1 = vpack.c.bf16 %v1006_v45, %v1005_v56  ;;  %v2713_v63 = vpack.c.bf16 %v990_v3, %v989_v51  ;;  %v1025_v4 = vld [vmem:[%s4417_s1 + $0x750] sm:$0xff]  ;;  %v1475_v56 = vld [vmem:[%s4417_s1 + $0x908] sm:$0xff]  ;;  %v2928_v51 = vmov 0.0|0.0  }
  0xc8   :  { %2700 = vmatprep.subr.bf16.mxu0 %v2699_v5  ;;  %v1026_v5 = vld [vmem:[%s4417_s1 + $0x758] sm:$0xff]  ;;  %v2796_v50 = vpack.c.bf16 %v1475_v56, %v1474_v43  ;;  %v2930_v43 = vmov 0.0   ;;  %v2811_v56 = vpack.c.bf16 %v1485_v37, %v1484_v36 }
  0xc9   :  { %1891 = vmatmul.mubr.msk.f32.gmra.mrb[22].mxu1 %vm839_vm5, %v2927_v62  ;;  %vm856_vm5 = vcmp.eq.s32.totalorder %v3572_v2, %v3214_v54  ;;  %v2753_v16 = vpack.c.bf16 %v1026_v5, %v1025_v4  ;;  %v1478_v5 = vld [vmem:[%s4417_s1 + $0x920] sm:$0xff]  ;;  %v1630_v36 = vld [vmem:[%s4417_s1 + $0x9f8] sm:$0xff] }
  0xca   :  { %1839 = vmatmul.mubr.msk.f32.vlgmr.msra.gmra.mrb[20].mxu0 %vm47_vm7, %v2927_v62  ;;  %1892 = vmatprep.mubr.msk.f32.mxu1 %vm848_vm12, %v2927_v62  ;;  %vm64_vm7 = vcmp.eq.s32.totalorder %v3264_v8, %v3428_v10  ;;  %vm864_vm12 = vcmp.eq.s32.totalorder %v3487_v34, %v3214_v54  ;;  %v2751_v54 = vpack.c.bf16 %v1042_v58, %v1041_v57  ;;  %v1476_v57 = vld [vmem:[%s4417_s1 + $0x910] sm:$0xff]  ;;  %v1477_v58 = vld [vmem:[%s4417_s1 + $0x918] sm:$0xff] }
  0xcb   :  { %2738 = vmatpush3.bf16.msra.mxu1 %v2737_v19  ;;  %1840 = vmatprep.mubr.msk.f32.mxu0 %vm56_vm14, %v2927_v62  ;;  %vm855_vm14 = vcmp.eq.s32.totalorder %v3572_v2, %v3211_v53  ;;  %v2755_v19 = vpack.c.bf16 %v1044_v14, %v1043_v12  ;;  %v1050_v12 = vld [vmem:[%s4417_s1 + $0x818] sm:$0xff]  ;;  %v1067_v14 = vld [vmem:[%s4417_s1 + $0x8a0] sm:$0xff] }
  0xcc   :  { %2702 = vmatpush3.bf16.msra.mxu0 %v2701_v20  ;;  %2740 = vmatprep.subr.bf16.mxu1 %v2739_v22  ;;  %v1027_v20 = vld [vmem:[%s4417_s1 + $0x760] sm:$0xff]  ;;  %v1028_v22 = vld [vmem:[%s4417_s1 + $0x768] sm:$0xff] }
  0xcd   :  { %1893 = vmatmul.mubr.msk.f32.gmra.mrb[24].mxu1 %vm847_vm0, %v2927_v62  ;;  %2704 = vmatprep.subr.bf16.mxu0 %v2703_v25  ;;  %vm63_vm0 = vcmp.eq.s32.totalorder %v3264_v8, %v3431_v11  ;;  %v1007_v8 = vld [vmem:[%s4417_s1 + $0x6c0] sm:$0xff]  ;;  %v1045_v25 = vld [vmem:[%s4417_s1 + $0x7f0] sm:$0xff]  ;;  %v2757_v30 = vpack.c.bf16 %v1028_v22, %v1027_v20 }
  0xce   :  { %1841 = vmatmul.mubr.msk.f32.gmra.mrb[22].mxu0 %vm55_vm2, %v2927_v62  ;;  %1894 = vmatprep.mubr.msk.f32.mxu1 %vm856_vm5, %v2927_v62  ;;  %vm72_vm2 = vcmp.eq.s32.totalorder %v3317_v29, %v3428_v10  ;;  %vm863_vm5 = vcmp.eq.s32.totalorder %v3487_v34, %v3211_v53  ;;  %v2715_v7 = vpack.c.bf16 %v1008_v59, %v1007_v8  ;;  %v1047_v8 = vld [vmem:[%s4417_s1 + $0x800] sm:$0xff]  ;;  %v1048_v59 = vld [vmem:[%s4417_s1 + $0x808] sm:$0xff] }
  0xcf   :  { %2742 = vmatpush3.bf16.msra.mxu1 %v2741_v32  ;;  %1842 = vmatprep.mubr.msk.f32.mxu0 %vm64_vm7, %v2927_v62  ;;  %vm71_vm7 = vcmp.eq.s32.totalorder %v3317_v29, %v3431_v11  ;;  %v1009_v29 = vld [vmem:[%s4417_s1 + $0x6d0] sm:$0xff]  ;;  %v2759_v31 = vpack.c.bf16 %v1046_v26, %v1045_v25  ;;  %v2765_v4 = vpack.c.bf16 %v1048_v59, %v1047_v8  ;;  %v1051_v22 = vld [vmem:[%s4417_s1 + $0x820] sm:$0xff] }
  0xd0   :  { %2706 = vmatpush3.bf16.msra.mxu0 %v2705_v33  ;;  %2744 = vmatprep.subr.bf16.mxu1 %v2743_v35  ;;  %v2719_v24 = vpack.c.bf16 %v1010_v15, %v1009_v29  ;;  %v1029_v32 = vld [vmem:[%s4417_s1 + $0x770] sm:$0xff]  ;;  %v1030_v33 = vld [vmem:[%s4417_s1 + $0x778] sm:$0xff]  ;;  %v1068_v29 = vld [vmem:[%s4417_s1 + $0x8a8] sm:$0xff]  ;;  %v2802_v15 = vpack.c.bf16 %v1479_v6, %v1478_v5  ;;  %v2773_v26 = vpack.c.bf16 %v1052_v23, %v1051_v22 }
  0xd1   :  { %1895 = vmatmul.mubr.msk.f32.gmra.mrb[26].mxu1 %vm855_vm14, %v2927_v62  ;;  %2708 = vmatprep.subr.bf16.mxu0 %v2707_v40  ;;  %vm80_vm14 = vcmp.eq.s32.totalorder %v3387_v55, %v3428_v10  ;;  %v1014_v40 = vld [vmem:[%s4417_s1 + $0x6f8] sm:$0xff]  ;;  %v2761_v41 = vpack.c.bf16 %v1030_v33, %v1029_v32  ;;  %v2771_v20 = vpack.c.bf16 %v1068_v29, %v1067_v14  ;;  %v1072_v32 = vld [vmem:[%s4417_s1 + $0x8c8] sm:$0xff]  ;;  %v1059_v59 = vld [vmem:[%s4417_s1 + $0x860] sm:$0xff]  ;;  %v1446_v29 = vpop.permute.xlu1 %1445 }
  0xd2   :  { %1843 = vmatmul.mubr.msk.f32.gmra.mrb[24].mxu0 %vm63_vm0, %v2927_v62  ;;  %1896 = vmatprep.mubr.msk.f32.mxu1 %vm864_vm12, %v2927_v62  ;;  %vm836_vm12 = vcmp.eq.s32.totalorder %v3500_v38, %v3391_v0  ;;  %vm79_vm0 = vcmp.eq.s32.totalorder %v3387_v55, %v3431_v11  ;;  %v1011_v55 = vld [vmem:[%s4417_s1 + $0x6e0] sm:$0xff]  ;;  %v2727_v45 = vpack.c.bf16 %v1014_v40, %v1013_v39  ;;  %v1056_v40 = vld [vmem:[%s4417_s1 + $0x848] sm:$0xff]  ;;  %v1062_v14 = vld [vmem:[%s4417_s1 + $0x878] sm:$0xff] }
  0xd3   :  { %2746 = vmatpush3.bf16.msra.mxu1 %v2745_v46  ;;  %1844 = vmatprep.mubr.msk.f32.mxu0 %vm72_vm2, %v2927_v62  ;;  %vm834_vm2 = vcmp.eq.s32.totalorder %v3500_v38, %v3439_v13  ;;  %v2723_v35 = vpack.c.bf16 %v1012_v27, %v1011_v55  ;;  %v997_v46 = vld [vmem:[%s4417_s1 + $0x670] sm:$0xff]  ;;  %v1482_v55 = vld [vmem:[%s4417_s1 + $0x940] sm:$0xff]  ;;  %v1483_v27 = vld [vmem:[%s4417_s1 + $0x948] sm:$0xff] }
  0xd4   :  { %2710 = vmatpush3.bf16.msra.mxu0 %v2709_v47  ;;  %2748 = vmatprep.subr.bf16.mxu1 %v2747_v48  ;;  %v998_v47 = vld [vmem:[%s4417_s1 + $0x678] sm:$0xff]  ;;  %v1063_v48 = vld [vmem:[%s4417_s1 + $0x880] sm:$0xff]  ;;  %v2808_v33 = vpack.c.bf16 %v1483_v27, %v1482_v55 }
  0xd5   :  { %1897 = vmatmul.mubr.msk.f32.gmra.mrb[28].mxu1 %vm863_vm5, %v2927_v62  ;;  %2712 = vmatprep.subr.bf16.mxu0 %v2711_v1  ;;  %v2729_v1 = vpack.c.bf16 %v998_v47, %v997_v46  ;;  %vm835_vm5 = vcmp.eq.s32.totalorder %v3500_v38, %v3512_v44  ;;  %v2763_v3 = vpack.c.bf16 %v1064_v49, %v1063_v48  ;;  %v1487_v46 = vld [vmem:[%s4417_s1 + $0x968] sm:$0xff]  ;;  %v1057_v48 = vld [vmem:[%s4417_s1 + $0x850] sm:$0xff]  ;;  %v1058_v49 = vld [vmem:[%s4417_s1 + $0x858] sm:$0xff]  ;;  %v1452_v23 = vpop.permute.xlu1 %1451 }
  0xd6   :  { %1845 = vmatmul.mubr.msk.f32.gmra.mrb[26].mxu0 %vm71_vm7, %v2927_v62  ;;  %1908 = vmatprep.mubr.msk.f32.mxu1 %vm836_vm12, %v2927_v62  ;;  %vm844_vm7 = vcmp.eq.s32.totalorder %v3450_v17, %v3391_v0  ;;  %vm843_vm12 = vcmp.eq.s32.totalorder %v3450_v17, %v3512_v44  ;;  %v1615_v6 = vld [vmem:[%s4417_s1 + $0x980] sm:$0xff]  ;;  %v1622_v55 = vld [vmem:[%s4417_s1 + $0x9b8] sm:$0xff] }
  0xd7   :  { %2750 = vmatpush3.bf16.msra.mxu1 %v2749_v60  ;;  %1846 = vmatprep.mubr.msk.f32.mxu0 %vm80_vm14, %v2927_v62  ;;  %v1065_v60 = vld [vmem:[%s4417_s1 + $0x890] sm:$0xff]  ;;  %vm833_vm14 = vcmp.eq.s32.totalorder %v3500_v38, %v3552_v61 }
  0xd8   :  { %2714 = vmatpush3.bf16.msra.mxu0 %v2713_v63  ;;  %2752 = vmatprep.subr.bf16.mxu1 %v2751_v54  ;;  %v1066_v63 = vld [vmem:[%s4417_s1 + $0x898] sm:$0xff]  ;;  %v2799_v54 = vpack.c.bf16 %v1477_v58, %v1476_v57  ;;  %v1488_v57 = vld [vmem:[%s4417_s1 + $0x970] sm:$0xff] }
  0xd9   :  { %2716 = vmatprep.subr.bf16.mxu0 %v2715_v7  ;;  %v2767_v7 = vpack.c.bf16 %v1066_v63, %v1065_v60  ;;  %v1489_v58 = vld [vmem:[%s4417_s1 + $0x978] sm:$0xff]  ;;  %v1060_v60 = vld [vmem:[%s4417_s1 + $0x868] sm:$0xff]  ;;  %v1077_v63 = vld [vmem:[%s4417_s1 + $0x8f0] sm:$0xff]  ;;  %v1455_v38 = vpop.permute.xlu1 %1454 }
  0xda   :  { %1847 = vmatmul.mubr.msk.f32.gmra.mrb[28].mxu0 %vm79_vm0, %v2927_v62  ;;  %vm852_vm0 = vcmp.eq.s32.totalorder %v3533_v52, %v3391_v0  ;;  %v2789_v5 = vpack.c.bf16 %v1060_v60, %v1059_v59 }
  0xdb   :  { %2754 = vmatpush3.bf16.msra.mxu1 %v2753_v16  ;;  %1898 = vmatprep.mubr.msk.f32.mxu0 %vm834_vm2, %v2927_v62  ;;  %vm842_vm2 = vcmp.eq.s32.totalorder %v3450_v17, %v3439_v13  ;;  %v2769_v16 = vpack.c.bf16 %v1050_v12, %v1049_v9  ;;  %v1061_v12 = vld [vmem:[%s4417_s1 + $0x870] sm:$0xff] }
  0xdc   :  { %2718 = vmatpush3.bf16.msra.mxu0 %v2717_v18  ;;  %2756 = vmatprep.subr.bf16.mxu1 %v2755_v19  ;;  %v1480_v18 = vld [vmem:[%s4417_s1 + $0x930] sm:$0xff]  ;;  %v1481_v19 = vld [vmem:[%s4417_s1 + $0x938] sm:$0xff] }
  0xdd   :  { %2720 = vmatprep.subr.bf16.mxu0 %v2719_v24  ;;  %v1069_v24 = vld [vmem:[%s4417_s1 + $0x8b0] sm:$0xff]  ;;  %v2805_v25 = vpack.c.bf16 %v1481_v19, %v1480_v18  ;;  %v2793_v18 = vpack.c.bf16 %v1062_v14, %v1061_v12  ;;  %v1593_v11 = vpop.permute.xlu1 %1592 }
  0xde   :  { %v1617_v19 = vld [vmem:[%s4417_s1 + $0x990] sm:$0xff] }
  0xdf   :  { %2758 = vmatpush3.bf16.msra.mxu1 %v2757_v30  ;;  %v2775_v30 = vpack.c.bf16 %v1070_v21, %v1069_v24  ;;  %v1619_v24 = vld [vmem:[%s4417_s1 + $0x9a0] sm:$0xff]  ;;  %v1620_v21 = vld [vmem:[%s4417_s1 + $0x9a8] sm:$0xff] }
  0xe0   :  { %2722 = vmatpush3.bf16.msra.mxu0 %v2721_v28  ;;  %2760 = vmatprep.subr.bf16.mxu1 %v2759_v31  ;;  %v1053_v28 = vld [vmem:[%s4417_s1 + $0x830] sm:$0xff]  ;;  %v1054_v31 = vld [vmem:[%s4417_s1 + $0x838] sm:$0xff] }
  0xe1   :  { %2724 = vmatprep.subr.bf16.mxu0 %v2723_v35  ;;  %v2777_v35 = vpack.c.bf16 %v1054_v31, %v1053_v28  ;;  %v1623_v28 = vld [vmem:[%s4417_s1 + $0x9c0] sm:$0xff]  ;;  %v1624_v31 = vld [vmem:[%s4417_s1 + $0x9c8] sm:$0xff] }
  0xe3   :  { %2762 = vmatpush3.bf16.msra.mxu1 %v2761_v41  ;;  %v1073_v41 = vld [vmem:[%s4417_s1 + $0x8d0] sm:$0xff] }
  0xe4   :  { %2726 = vmatpush3.bf16.msra.mxu0 %v2725_v42  ;;  %2795 = vmatprep.subr.bf16.mxu1 %v2928_v51  ;;  %v1074_v42 = vld [vmem:[%s4417_s1 + $0x8d8] sm:$0xff] }
  0xe5   :  { %2728 = vmatprep.subr.bf16.mxu0 %v2727_v45  ;;  %v1486_v45 = vld [vmem:[%s4417_s1 + $0x960] sm:$0xff]  ;;  %v2783_v47 = vpack.c.bf16 %v1074_v42, %v1073_v41 }
  0xe6   :  { %1909 = vmatmul.mubr.msk.f32.vlgmr.msra.gmra.mrb[30].mxu1 %vm835_vm5, %v2927_v62  ;;  %vm851_vm5 = vcmp.eq.s32.totalorder %v3533_v52, %v3512_v44 }
  0xe7   :  { %1910 = vmatprep.mubr.msk.f32.mxu1 %vm844_vm7, %v2927_v62  ;;  %2797 = vmatpush3.bf16.msra.mxu1 %v2796_v50  ;;  %vm841_vm7 = vcmp.eq.s32.totalorder %v3450_v17, %v3552_v61  ;;  %v1075_v50 = vld [vmem:[%s4417_s1 + $0x8e0] sm:$0xff]  ;;  %v2832_v17 = vpack.c.bf16 %v1624_v31, %v1623_v28 }
  0xe8   :  { %2730 = vmatpush3.bf16.msra.mxu0 %v2729_v1  ;;  %2798 = vmatprep.subr.bf16.mxu1 %v2928_v51  ;;  %v2814_v1 = vpack.c.bf16 %v1487_v46, %v1486_v45 }
  0xe9   :  { %2764 = vmatprep.subr.bf16.mxu0 %v2763_v3  ;;  %v2785_v3 = vpack.c.bf16 %v1058_v49, %v1057_v48 }
  0xea   :  { %1911 = vmatmul.mubr.msk.f32.gmra.mrb[32].mxu1 %vm843_vm12, %v2927_v62  ;;  %vm860_vm12 = vcmp.eq.s32.totalorder %v3572_v2, %v3391_v0 }
  0xeb   :  { %1899 = vmatmul.mubr.msk.f32.vlgmr.msra.gmra.mrb[30].mxu0 %vm833_vm14, %v2927_v62  ;;  %1912 = vmatprep.mubr.msk.f32.mxu1 %vm852_vm0, %v2927_v62  ;;  %vm850_vm14 = vcmp.eq.s32.totalorder %v3533_v52, %v3439_v13  ;;  %vm859_vm0 = vcmp.eq.s32.totalorder %v3572_v2, %v3512_v44 }
  0xec   :  { %2800 = vmatpush3.bf16.msra.mxu1 %v2799_v54  ;;  %1900 = vmatprep.mubr.msk.f32.mxu0 %vm842_vm2, %v2927_v62  ;;  %vm849_vm2 = vcmp.eq.s32.totalorder %v3533_v52, %v3552_v61  ;;  %v1078_v54 = vld [vmem:[%s4417_s1 + $0x8f8] sm:$0xff] }
  0xed   :  { %2766 = vmatpush3.bf16.msra.mxu0 %v2765_v4  ;;  %2801 = vmatprep.subr.bf16.mxu1 %v2928_v51  ;;  %v2817_v4 = vpack.c.bf16 %v1489_v58, %v1488_v57  ;;  %v2791_v9 = vpack.c.bf16 %v1078_v54, %v1077_v63 }
  0xee   :  { %1913 = vmatmul.mubr.msk.f32.gmra.mrb[34].mxu1 %vm851_vm5, %v2927_v62  ;;  %2768 = vmatprep.subr.bf16.mxu0 %v2767_v7  ;;  %vm868_vm5 = vcmp.eq.s32.totalorder %v3487_v34, %v3391_v0  ;;  %v1071_v0 = vld [vmem:[%s4417_s1 + $0x8c0] sm:$0xff]  ;;  %v1616_v7 = vld [vmem:[%s4417_s1 + $0x988] sm:$0xff] }
  0xef   :  { %1901 = vmatmul.mubr.msk.f32.gmra.mrb[32].mxu0 %vm841_vm7, %v2927_v62  ;;  %1914 = vmatprep.mubr.msk.f32.mxu1 %vm860_vm12, %v2927_v62  ;;  %vm858_vm7 = vcmp.eq.s32.totalorder %v3572_v2, %v3439_v13  ;;  %vm867_vm12 = vcmp.eq.s32.totalorder %v3487_v34, %v3512_v44  ;;  %v2779_v39 = vpack.c.bf16 %v1072_v32, %v1071_v0  ;;  %v1055_v44 = vld [vmem:[%s4417_s1 + $0x840] sm:$0xff]  ;;  %v1625_v0 = vld [vmem:[%s4417_s1 + $0x9d0] sm:$0xff]  ;;  %v1626_v32 = vld [vmem:[%s4417_s1 + $0x9d8] sm:$0xff] }
  0xf0   :  { %2803 = vmatpush3.bf16.msra.mxu1 %v2802_v15  ;;  %1902 = vmatprep.mubr.msk.f32.mxu0 %vm850_vm14, %v2927_v62  ;;  %vm857_vm14 = vcmp.eq.s32.totalorder %v3572_v2, %v3552_v61  ;;  %v2820_v15 = vpack.c.bf16 %v1616_v7, %v1615_v6  ;;  %v2835_v52 = vpack.c.bf16 %v1626_v32, %v1625_v0  ;;  %v1629_v2 = vld [vmem:[%s4417_s1 + $0x9f0] sm:$0xff] }
  0xf1   :  { %2770 = vmatpush3.bf16.msra.mxu0 %v2769_v16  ;;  %2804 = vmatprep.subr.bf16.mxu1 %v2928_v51  ;;  %v1449_v16 = vpop.permute.xlu0 %1448 }
  0xf2   :  { %1915 = vmatmul.mubr.msk.f32.gmra.mrb[36].mxu1 %vm859_vm0, %v2927_v62  ;;  %2772 = vmatprep.subr.bf16.mxu0 %v2771_v20  ;;  %vm866_vm0 = vcmp.eq.s32.totalorder %v3487_v34, %v3439_v13  ;;  %v2781_v13 = vpack.c.bf16 %v1056_v40, %v1055_v44  ;;  %v1618_v20 = vld [vmem:[%s4417_s1 + $0x998] sm:$0xff] }
  0xf3   :  { %1903 = vmatmul.mubr.msk.f32.gmra.mrb[34].mxu0 %vm849_vm2, %v2927_v62  ;;  %1916 = vmatprep.mubr.msk.f32.mxu1 %vm868_vm5, %v2927_v62  ;;  %vm2929_vm2 = vmmov 0   ;;  %vm865_vm5 = vcmp.eq.s32.totalorder %v3487_v34, %v3552_v61  ;;  %v1076_v61 = vld [vmem:[%s4417_s1 + $0x8e8] sm:$0xff]  ;;  %v2823_v22 = vpack.c.bf16 %v1618_v20, %v1617_v19  ;;  %v2841_v34 = vpack.c.bf16 %v1630_v36, %v1629_v2 }
  0xf4   :  { %2806 = vmatpush3.bf16.msra.mxu1 %v2805_v25  ;;  %1904 = vmatprep.mubr.msk.f32.mxu0 %vm858_vm7, %v2927_v62  ;;  %v2787_v8 = vpack.c.bf16 %v1076_v61, %v1075_v50  ;;  %vm1460_vm7 = vcmp.eq.s32.totalorder %v1449_v16, %v3211_v53  ;;  %v2826_v25 = vpack.c.bf16 %v1620_v21, %v1619_v24 }
  0xf5   :  { %2774 = vmatpush3.bf16.msra.mxu0 %v2773_v26  ;;  %2807 = vmatprep.subr.bf16.mxu1 %v2928_v51  ;;  %v1621_v26 = vld [vmem:[%s4417_s1 + $0x9b0] sm:$0xff] }
  0xf6   :  { %1917 = vmatmul.mubr.msk.f32.gmra.mrb[38].mxu1 %vm867_vm12, %v2927_v62  ;;  %2776 = vmatprep.subr.bf16.mxu0 %v2775_v30  ;;  %vm1461_vm12 = vcmp.eq.s32.totalorder %v1452_v23, %v3211_v53  ;;  %v2829_v27 = vpack.c.bf16 %v1622_v55, %v1621_v26  ;;  %v1458_v30 = vpop.permute.xlu0 %1457 }
  0xf7   :  { %1905 = vmatmul.mubr.msk.f32.gmra.mrb[36].mxu0 %vm857_vm14, %v2927_v62  ;;  %2445 = vmatprep.mubr.msk.f32.mxu1 %vm2929_vm2, %v2930_v43 }
  0xf8   :  { %2809 = vmatpush3.bf16.msra.mxu1 %v2808_v33  ;;  %1906 = vmatprep.mubr.msk.f32.mxu0 %vm866_vm0, %v2927_v62  ;;  %v1627_v33 = vld [vmem:[%s4417_s1 + $0x9e0] sm:$0xff] }
  0xf9   :  { %2778 = vmatpush3.bf16.msra.mxu0 %v2777_v35  ;;  %2810 = vmatprep.subr.bf16.mxu1 %v2928_v51  ;;  %v1628_v35 = vld [vmem:[%s4417_s1 + $0x9e8] sm:$0xff]  ;;  %s2931_s1 = smov [#allocation2]  }
  0xfa   :  { %2780 = vmatprep.subr.bf16.mxu0 %v2779_v39  ;;  %v2838_v10 = vpack.c.bf16 %v1628_v35, %v1627_v33  ;;  %v1587_v37 = vpop.permute.xlu0 %1586  ;;  %v1596_v39 = vpop.permute.xlu1 %1595  ;;  %s1737_s23 = sshll.u32 %s2931_s1, 4  ;;  %s1738_s23 = int_to_ptr.vmem [resolvable:$true] %s1737_s23 }
  0xfb   :  { %1907 = vmatmul.mubr.msk.f32.gmra.mrb[38].mxu0 %vm865_vm5, %v2927_v62  ;;  %s2898_s24 = scalar_lea.vmem %s1738_s23, 640  ;;  %p2903_p1 = scmp.lt.s32.totalorder %s1738_s23, %s1738_s23 }
  0xfc   :  { %2812 = vmatpush3.bf16.msra.mxu1 %v2811_v56  ;;  %1918 = vmatprep.mubr.msk.f32.mxu0 %vm838_vm10, %v2927_v62  ;;  %vm1459_vm10 = vcmp.eq.s32.totalorder %v1446_v29, %v3211_v53  ;;  %p2899_p0 = scmp.ne.s32.totalorder %s1738_s23, %s2898_s24  ;;  %p2904_p2 = scmp.lt.s32.totalorder %s2898_s24, %s2898_s24 }
  0xfd   :  { %2782 = vmatpush3.bf16.msra.mxu0 %v2781_v13  ;;  %2813 = vmatprep.subr.bf16.mxu1 %v2928_v51 }
  0xfe   :  { %2784 = vmatprep.subr.bf16.mxu0 %v2783_v47  ;;  %v1599_v44 = vpop.permute.xlu0 %1598  ;;  %v1590_v40 = vpop.permute.xlu1 %1589  ;;  %p2905_p3 = por %p2904_p2, %p2903_p1 }
 0x100   :  { %2815 = vmatpush3.bf16.msra.mxu1 %v2814_v1  ;;  %p2906_p4 = pnand %p2905_p3, %p2899_p0 }
 0x101   :  { %2786 = vmatpush3.bf16.msra.mxu0 %v2785_v3  ;;  %2816 = vmatprep.subr.bf16.mxu1 %v2928_v51 }
 0x102   :  { %2788 = vmatprep.subr.bf16.mxu0 %v2787_v8 }
 0x104   :  { %2818 = vmatpush3.bf16.msra.mxu1 %v2817_v4 }
 0x105   :  { %2790 = vmatpush3.bf16.msra.mxu0 %v2789_v5  ;;  %2843 = vmatprep.subr.bf16.mxu1 %v2928_v51 }
 0x106   :  { %2792 = vmatprep.subr.bf16.mxu0 %v2791_v9 }
 0x107   :  { %2446 = vmatmul.mubr.msk.f32.vlgmr.msra.gmra.mrb[40].mxu1 %vm1459_vm10, %v2927_v62 }
 0x108   :  { %2851 = vmatpush3.bf16.msra.mxu1 %v2820_v15  ;;  %2448 = vmatprep.mubr.msk.f32.mxu1 %vm2929_vm2, %v2930_v43 }
 0x109   :  { %2794 = vmatpush3.bf16.msra.mxu0 %v2793_v18  ;;  %2844 = vmatprep.subr.bf16.mxu1 %v2928_v51 }
 0x10a   :  { %2819 = vmatprep.subr.bf16.mxu0 %v2928_v51 }
 0x10b   :  { %2449 = vmatmul.mubr.msk.f32.gmra.mrb[42].mxu1 %vm1460_vm7, %v2927_v62 }
 0x10c   :  { %1919 = vmatmul.mubr.msk.f32.vlgmr.msra.gmra.mrb[40].mxu0 %vm837_vm11, %v2927_v62  ;;  %2852 = vmatpush3.bf16.msra.mxu1 %v2823_v22  ;;  %vm1603_vm11 = vcmp.eq.s32.totalorder %v1596_v39, %v3211_v53 }
 0x10d   :  { %1920 = vmatprep.mubr.msk.f32.mxu0 %vm846_vm3, %v2927_v62  ;;  %2821 = vmatpush3.bf16.msra.mxu0 %v2820_v15  ;;  %vm1462_vm3 = vcmp.eq.s32.totalorder %v1455_v38, %v3211_v53 }
 0x10e   :  { %2451 = vmatprep.mubr.msk.f32.mxu1 %vm2929_vm2, %v2930_v43  ;;  %2845 = vmatprep.subr.bf16.mxu1 %v2928_v51 }
 0x10f   :  { %2452 = vmatmul.mubr.msk.f32.gmra.mrb[44].mxu1 %vm1461_vm12, %v2927_v62  ;;  %2822 = vmatprep.subr.bf16.mxu0 %v2928_v51 }
 0x110   :  { %1921 = vmatmul.mubr.msk.f32.gmra.mrb[42].mxu0 %vm845_vm4, %v2927_v62  ;;  %2853 = vmatpush3.bf16.msra.mxu1 %v2826_v25  ;;  %vm1463_vm4 = vcmp.eq.s32.totalorder %v1458_v30, %v3211_v53 }
 0x111   :  { %1922 = vmatprep.mubr.msk.f32.mxu0 %vm854_vm13, %v2927_v62  ;;  %2824 = vmatpush3.bf16.msra.mxu0 %v2823_v22  ;;  %vm1604_vm13 = vcmp.eq.s32.totalorder %v1599_v44, %v3211_v53 }
 0x112   :  { %2454 = vmatprep.mubr.msk.f32.mxu1 %vm2929_vm2, %v2930_v43  ;;  %2846 = vmatprep.subr.bf16.mxu1 %v2928_v51 }
 0x113   :  { %2455 = vmatmul.mubr.msk.f32.gmra.mrb[46].mxu1 %vm1462_vm3, %v2927_v62  ;;  %2825 = vmatprep.subr.bf16.mxu0 %v2928_v51 }
 0x114   :  { %1923 = vmatmul.mubr.msk.f32.gmra.mrb[44].mxu0 %vm853_vm15, %v2927_v62  ;;  %2854 = vmatpush3.bf16.msra.mxu1 %v2829_v27  ;;  %vm1601_vm15 = vcmp.eq.s32.totalorder %v1590_v40, %v3211_v53 }
 0x115   :  { %1924 = vmatprep.mubr.msk.f32.mxu0 %vm862_vm1, %v2927_v62  ;;  %2827 = vmatpush3.bf16.msra.mxu0 %v2826_v25  ;;  %vm1726_vm1 = vcmask 392192  }
 0x116   :  { %2457 = vmatprep.mubr.msk.f32.mxu1 %vm2929_vm2, %v2930_v43  ;;  %2847 = vmatprep.subr.bf16.mxu1 %v2928_v51 }
 0x117   :  { %2458 = vmatmul.mubr.msk.f32.gmra.mrb[48].mxu1 %vm1463_vm4, %v2927_v62  ;;  %2828 = vmatprep.subr.bf16.mxu0 %v2928_v51 }
 0x118   :  { %1925 = vmatmul.mubr.msk.f32.gmra.mrb[46].mxu0 %vm861_vm6, %v2927_v62  ;;  %2855 = vmatpush3.bf16.msra.mxu1 %v2832_v17 }
 0x119   :  { %1926 = vmatprep.mubr.msk.f32.mxu0 %vm870_vm8, %v2927_v62  ;;  %2830 = vmatpush3.bf16.msra.mxu0 %v2829_v27  ;;  %vm1602_vm8 = vcmp.eq.s32.totalorder %v1593_v11, %v3211_v53 }
 0x11a   :  { %2848 = vmatprep.subr.bf16.mxu1 %v2928_v51  ;;  %2831 = vmatprep.subr.bf16.mxu0 %v2928_v51 }
 0x11b   :  { %2498 = vmatprep.mubr.msk.f32.mxu1 %vm2929_vm2, %v2930_v43 }
 0x11c   :  { %1927 = vmatmul.mubr.msk.f32.gmra.mrb[48].mxu0 %vm869_vm9, %v2927_v62  ;;  %2856 = vmatpush3.bf16.msra.mxu1 %v2835_v52  ;;  %vm1600_vm9 = vcmp.eq.s32.totalorder %v1587_v37, %v3211_v53 }
 0x11d   :  { %2833 = vmatpush3.bf16.msra.mxu0 %v2832_v17  ;;  %2849 = vmatprep.subr.bf16.mxu1 %v2928_v51 }
 0x11e   :  { %2834 = vmatprep.subr.bf16.mxu0 %v2928_v51  ;;  %2492 = vmatprep.mubr.msk.f32.mxu0 %vm2929_vm2, %v2930_v43 }
 0x120   :  { %2857 = vmatpush3.bf16.msra.mxu1 %v2838_v10 }
 0x121   :  { %2836 = vmatpush3.bf16.msra.mxu0 %v2835_v52  ;;  %2850 = vmatprep.subr.bf16.mxu1 %v2928_v51 }
 0x122   :  { %2837 = vmatprep.subr.bf16.mxu0 %v2928_v51 }
 0x124   :  { %2858 = vmatpush3.bf16.msra.mxu1 %v2841_v34 }
 0x125   :  { %2839 = vmatpush3.bf16.msra.mxu0 %v2838_v10 }
 0x126   :  { %2840 = vmatprep.subr.bf16.mxu0 %v2928_v51 }
 0x127   :  { %2499 = vmatmul.mubr.msk.f32.vlgmr.msra.gmra.mrb[44].mxu1 %vm1602_vm8, %v2927_v62 }
 0x128   :  { %2501 = vmatprep.mubr.msk.f32.mxu1 %vm2929_vm2, %v2930_v43 }
 0x129   :  { %2842 = vmatpush3.bf16.msra.mxu0 %v2841_v34 }
 0x12b   :  { %2502 = vmatmul.mubr.msk.f32.gmra.mrb[46].mxu1 %vm1603_vm11, %v2927_v62 }
 0x12c   :  { %2493 = vmatmul.mubr.msk.f32.vlgmr.msra.gmra.mrb[50].mxu0 %vm1600_vm9, %v2927_v62  ;;  %2504 = vmatprep.mubr.msk.f32.mxu1 %vm2929_vm2, %v2930_v43 }
 0x12d   :  { %2495 = vmatprep.mubr.msk.f32.mxu0 %vm2929_vm2, %v2930_v43 }
 0x12f   :  { %2505 = vmatmul.mubr.msk.f32.gmra.mrb[48].mxu1 %vm1604_vm13, %v2927_v62 }
 0x130   :  { %2496 = vmatmul.mubr.msk.f32.gmra.mrb[52].mxu0 %vm1601_vm15, %v2927_v62 }
 0x157   :  { %v2027_v51 = vpop.f32.mrb[0].mxu1 }
 0x158   :  { %v2028_v41 = vpop.f32.mrb[1].mxu1 }
 0x159   :  { %v2029_v42 = vadd.f32 %v2028_v41, %v2027_v51 }
 0x15b   :  { %v2030_v56 = vpop.f32.mrb[2].mxu1 }
 0x15c   :  { %v1980_v13 = vpop.f32.mrb[0].mxu0  ;;  %v2031_v45 = vpop.f32.mrb[3].mxu1 }
 0x15d   :  { %v1981_v46 = vpop.f32.mrb[1].mxu0  ;;  %v2032_v47 = vadd.f32 %v2031_v45, %v2030_v56 }
 0x15e   :  { %v1982_v48 = vadd.f32 %v1981_v46, %v1980_v13 }
 0x15f   :  { %v2033_v49 = vpop.f32.mrb[4].mxu1 }
 0x160   :  { %v523_v50 = vadd.f32 %v2029_v42, %v1982_v48  ;;  %v1983_v43 = vpop.f32.mrb[2].mxu0  ;;  %v2034_v61 = vpop.f32.mrb[5].mxu1 }
 0x161   :  { %v2035_v1 = vadd.f32 %v2034_v61, %v2033_v49  ;;  %v1984_v3 = vpop.f32.mrb[3].mxu0 }
 0x162   :  { %v1985_v53 = vadd.f32 %v1984_v3, %v1983_v43 }
 0x163   :  { %v2036_v57 = vpop.f32.mrb[6].mxu1 }
 0x164   :  { %v528_v58 = vadd.f32 %v2032_v47, %v1985_v53  ;;  %v1986_v8 = vpop.f32.mrb[4].mxu0  ;;  %v2037_v62 = vpop.f32.mrb[7].mxu1 }
 0x165   :  { %v1987_v59 = vpop.f32.mrb[5].mxu0  ;;  %v2038_v60 = vadd.f32 %v2037_v62, %v2036_v57 }
 0x166   :  { %v1988_v63 = vadd.f32 %v1987_v59, %v1986_v8 }
 0x168   :  { %v533_v54 = vadd.f32 %v2035_v1, %v1988_v63 }
 0x169   :  { %v2039_v4 = vpop.f32.mrb[8].mxu1 }
 0x16a   :  { %v1989_v5 = vpop.f32.mrb[6].mxu0  ;;  %v2040_v6 = vpop.f32.mrb[9].mxu1 }
 0x16b   :  { %v1990_v7 = vpop.f32.mrb[7].mxu0  ;;  %v2041_v9 = vadd.f32 %v2040_v6, %v2039_v4 }
 0x16c   :  { %v1991_v12 = vadd.f32 %v1990_v7, %v1989_v5 }
 0x16e   :  { %v538_v14 = vadd.f32 %v2038_v60, %v1991_v12  ;;  %v1992_v29 = vpop.f32.mrb[8].mxu0 }
 0x16f   :  { %v1993_v15 = vpop.f32.mrb[9].mxu0 }
 0x170   :  { %v1994_v16 = vadd.f32 %v1993_v15, %v1992_v29 }
 0x172   :  { %v543_v18 = vadd.f32 %v2041_v9, %v1994_v16 }
 0x177   :  { %v2121_v19 = vpop.f32.mrb[10].mxu1 }
 0x178   :  { %v2122_v20 = vpop.f32.mrb[11].mxu1 }
 0x179   :  { %v2123_v22 = vadd.f32 %v2122_v20, %v2121_v19 }
 0x17b   :  { %v2124_v23 = vpop.f32.mrb[12].mxu1 }
 0x17c   :  { %v2074_v24 = vpop.f32.mrb[10].mxu0  ;;  %v2125_v21 = vpop.f32.mrb[13].mxu1 }
 0x17d   :  { %v2126_v25 = vadd.f32 %v2125_v21, %v2124_v23  ;;  %v2075_v26 = vpop.f32.mrb[11].mxu0 }
 0x17e   :  { %v2076_v55 = vadd.f32 %v2075_v26, %v2074_v24 }
 0x17f   :  { %v2127_v38 = vpop.f32.mrb[14].mxu1 }
 0x180   :  { %v613_v27 = vadd.f32 %v2076_v55, %v523_v50  ;;  %v2077_v30 = vpop.f32.mrb[12].mxu0  ;;  %v2128_v28 = vpop.f32.mrb[15].mxu1 }
 0x181   :  { %v2129_v31 = vadd.f32 %v2128_v28, %v2127_v38  ;;  %v2078_v17 = vpop.f32.mrb[13].mxu0 }
 0x182   :  { %v2079_v0 = vadd.f32 %v2078_v17, %v2077_v30  ;;  %v703_v32 = vadd.f32 %v2123_v22, %v613_v27 }
 0x183   :  { %v2130_v52 = vpop.f32.mrb[16].mxu1 }
 0x184   :  { %v618_v33 = vadd.f32 %v2079_v0, %v528_v58  ;;  %v2080_v35 = vpop.f32.mrb[14].mxu0  ;;  %v2131_v10 = vpop.f32.mrb[17].mxu1 }
 0x185   :  { %v2132_v2 = vadd.f32 %v2131_v10, %v2130_v52  ;;  %v2081_v36 = vpop.f32.mrb[15].mxu0 }
 0x186   :  { %v2082_v11 = vadd.f32 %v2081_v36, %v2080_v35  ;;  %v708_v34 = vadd.f32 %v2126_v25, %v618_v33 }
 0x187   :  { %v2133_v37 = vpop.f32.mrb[18].mxu1 }
 0x188   :  { %v623_v39 = vadd.f32 %v2082_v11, %v533_v54  ;;  %v2083_v44 = vpop.f32.mrb[16].mxu0  ;;  %v2134_v40 = vpop.f32.mrb[19].mxu1 }
 0x189   :  { %v2135_v51 = vadd.f32 %v2134_v40, %v2133_v37  ;;  %v2084_v41 = vpop.f32.mrb[17].mxu0 }
 0x18a   :  { %v2085_v42 = vadd.f32 %v2084_v41, %v2083_v44  ;;  %v713_v56 = vadd.f32 %v2129_v31, %v623_v39 }
 0x18c   :  { %v628_v13 = vadd.f32 %v2085_v42, %v538_v14  ;;  %v2086_v45 = vpop.f32.mrb[18].mxu0 }
 0x18d   :  { %v2087_v46 = vpop.f32.mrb[19].mxu0 }
 0x18e   :  { %v2088_v47 = vadd.f32 %v2087_v46, %v2086_v45  ;;  %v718_v48 = vadd.f32 %v2132_v2, %v628_v13 }
 0x190   :  { %v633_v49 = vadd.f32 %v2088_v47, %v543_v18 }
 0x192   :  { %v723_v50 = vadd.f32 %v2135_v51, %v633_v49 }
 0x198   :  { %v2215_v43 = vpop.f32.mrb[20].mxu1 }
 0x199   :  { %v2216_v61 = vpop.f32.mrb[21].mxu1 }
 0x19a   :  { %v2217_v1 = vadd.f32 %v2216_v61, %v2215_v43 }
 0x19c   :  { %v2218_v3 = vpop.f32.mrb[22].mxu1 }
 0x19d   :  { %v2168_v53 = vpop.f32.mrb[20].mxu0  ;;  %v2219_v57 = vpop.f32.mrb[23].mxu1 }
 0x19e   :  { %v2169_v58 = vpop.f32.mrb[21].mxu0  ;;  %v2220_v8 = vadd.f32 %v2219_v57, %v2218_v3 }
 0x19f   :  { %v2170_v62 = vadd.f32 %v2169_v58, %v2168_v53 }
 0x1a0   :  { %v2221_v59 = vpop.f32.mrb[24].mxu1 }
 0x1a1   :  { %v4384_v60 = vadd.f32 %v2170_v62, %v703_v32  ;;  %v2171_v63 = vpop.f32.mrb[22].mxu0  ;;  %v2222_v54 = vpop.f32.mrb[25].mxu1 }
 0x1a2   :  { %v2223_v4 = vadd.f32 %v2222_v54, %v2221_v59  ;;  %v2172_v5 = vpop.f32.mrb[23].mxu0 }
 0x1a3   :  { %v2173_v6 = vadd.f32 %v2172_v5, %v2171_v63 }
 0x1a4   :  { %v2224_v7 = vpop.f32.mrb[26].mxu1 }
 0x1a5   :  { %v4386_v9 = vadd.f32 %v2173_v6, %v708_v34  ;;  %v2174_v12 = vpop.f32.mrb[24].mxu0  ;;  %v2225_v14 = vpop.f32.mrb[27].mxu1 }
 0x1a6   :  { %v2226_v29 = vadd.f32 %v2225_v14, %v2224_v7  ;;  %v2175_v15 = vpop.f32.mrb[25].mxu0 }
 0x1a7   :  { %v2176_v16 = vadd.f32 %v2175_v15, %v2174_v12 }
 0x1a8   :  { %v2227_v18 = vpop.f32.mrb[28].mxu1 }
 0x1a9   :  { %v4388_v19 = vadd.f32 %v2176_v16, %v713_v56  ;;  %v2177_v20 = vpop.f32.mrb[26].mxu0  ;;  %v2228_v22 = vpop.f32.mrb[29].mxu1 }
 0x1aa   :  { %v2229_v23 = vadd.f32 %v2228_v22, %v2227_v18  ;;  %v2178_v24 = vpop.f32.mrb[27].mxu0 }
 0x1ab   :  { %v2179_v21 = vadd.f32 %v2178_v24, %v2177_v20 }
 0x1ad   :  { %v4390_v25 = vadd.f32 %v2179_v21, %v718_v48  ;;  %v2180_v26 = vpop.f32.mrb[28].mxu0 }
 0x1ae   :  { %v2181_v55 = vpop.f32.mrb[29].mxu0 }
 0x1af   :  { %v2182_v38 = vadd.f32 %v2181_v55, %v2180_v26 }
 0x1b1   :  { %v4392_v27 = vadd.f32 %v2182_v38, %v723_v50 }
 0x1b9   :  { %v2309_v30 = vpop.f32.mrb[30].mxu1 }
 0x1ba   :  { %v2310_v28 = vpop.f32.mrb[31].mxu1 }
 0x1bb   :  { %v2311_v31 = vadd.f32 %v2310_v28, %v2309_v30 }
 0x1bd   :  { %v2312_v17 = vpop.f32.mrb[32].mxu1 }
 0x1be   :  { %v2262_v0 = vpop.f32.mrb[30].mxu0  ;;  %v2313_v32 = vpop.f32.mrb[33].mxu1 }
 0x1bf   :  { %v2314_v52 = vadd.f32 %v2313_v32, %v2312_v17  ;;  %v2263_v33 = vpop.f32.mrb[31].mxu0 }
 0x1c0   :  { %v2264_v35 = vadd.f32 %v2263_v33, %v2262_v0 }
 0x1c1   :  { %v2315_v10 = vpop.f32.mrb[34].mxu1 }
 0x1c2   :  { %v1236_v2 = vadd.f32 %v2264_v35, %v2217_v1  ;;  %v2265_v36 = vpop.f32.mrb[32].mxu0  ;;  %v2316_v11 = vpop.f32.mrb[35].mxu1 }
 0x1c3   :  { %v2317_v34 = vadd.f32 %v2316_v11, %v2315_v10  ;;  %v2266_v37 = vpop.f32.mrb[33].mxu0 }
 0x1c4   :  { %v2267_v39 = vadd.f32 %v2266_v37, %v2265_v36  ;;  %v1326_v44 = vadd.f32 %v2311_v31, %v1236_v2 }
 0x1c5   :  { %v2318_v40 = vpop.f32.mrb[36].mxu1 }
 0x1c6   :  { %v1241_v51 = vadd.f32 %v2267_v39, %v2220_v8  ;;  %v2268_v41 = vpop.f32.mrb[34].mxu0  ;;  %v2319_v42 = vpop.f32.mrb[37].mxu1 }
 0x1c7   :  { %v2320_v56 = vadd.f32 %v2319_v42, %v2318_v40  ;;  %v2269_v13 = vpop.f32.mrb[35].mxu0 }
 0x1c8   :  { %v2270_v45 = vadd.f32 %v2269_v13, %v2268_v41  ;;  %v1331_v46 = vadd.f32 %v2314_v52, %v1241_v51 }
 0x1c9   :  { %v2321_v47 = vpop.f32.mrb[38].mxu1 }
 0x1ca   :  { %v1246_v48 = vadd.f32 %v2270_v45, %v2223_v4  ;;  %v2271_v49 = vpop.f32.mrb[36].mxu0  ;;  %v2322_v50 = vpop.f32.mrb[39].mxu1 }
 0x1cb   :  { %v2323_v43 = vadd.f32 %v2322_v50, %v2321_v47  ;;  %v2272_v61 = vpop.f32.mrb[37].mxu0 }
 0x1cc   :  { %v2273_v1 = vadd.f32 %v2272_v61, %v2271_v49  ;;  %v1336_v3 = vadd.f32 %v2317_v34, %v1246_v48 }
 0x1ce   :  { %v1251_v53 = vadd.f32 %v2273_v1, %v2226_v29  ;;  %v2274_v57 = vpop.f32.mrb[38].mxu0 }
 0x1cf   :  { %v2275_v58 = vpop.f32.mrb[39].mxu0 }
 0x1d0   :  { %v2276_v62 = vadd.f32 %v2275_v58, %v2274_v57  ;;  %v1341_v59 = vadd.f32 %v2320_v56, %v1251_v53 }
 0x1d2   :  { %v1256_v8 = vadd.f32 %v2276_v62, %v2229_v23 }
 0x1d4   :  { %v1346_v63 = vadd.f32 %v2323_v43, %v1256_v8 }
 0x1da   :  { %v1556_v54 = vpop.f32.mrb[40].mxu1 }
 0x1db   :  { %v2447_v5 = vpop.f32.mrb[41].mxu1 }
 0x1de   :  { %v1561_v6 = vpop.f32.mrb[42].mxu1 }
 0x1df   :  { %v2356_v7 = vpop.f32.mrb[40].mxu0  ;;  %v2450_v12 = vpop.f32.mrb[43].mxu1 }
 0x1e0   :  { %v2357_v14 = vpop.f32.mrb[41].mxu0 }
 0x1e1   :  { %v2358_v4 = vadd.f32 %v2357_v14, %v2356_v7 }
 0x1e3   :  { %v1416_v15 = vadd.f32 %v2358_v4, %v1326_v44  ;;  %v2359_v16 = vpop.f32.mrb[42].mxu0 }
 0x1e4   :  { %v2360_v18 = vpop.f32.mrb[43].mxu0 }
 0x1e5   :  { %v2361_v20 = vadd.f32 %v2360_v18, %v2359_v16  ;;  %v1439_v22 = vadd.f32 %v1416_v15, %v4384_v60 }
 0x1e7   :  { %v1421_v29 = vadd.f32 %v2361_v20, %v1331_v46  ;;  %v2362_v24 = vpop.f32.mrb[44].mxu0  ;;  %v1580_v21 = vadd.f32 %v1556_v54, %v1439_v22 }
 0x1e8   :  { %v2363_v26 = vpop.f32.mrb[45].mxu0 }
 0x1e9   :  { %v2364_v55 = vadd.f32 %v2363_v26, %v2362_v24  ;;  %v1440_v23 = vadd.f32 %v1421_v29, %v4386_v9 }
 0x1eb   :  { %v1426_v38 = vadd.f32 %v2364_v55, %v1336_v3  ;;  %v1581_v30 = vadd.f32 %v1561_v6, %v1440_v23  ;;  %v2365_v28 = vpop.f32.mrb[46].mxu0 }
 0x1ec   :  { %v2366_v31 = vpop.f32.mrb[47].mxu0 }
 0x1ed   :  { %v2367_v17 = vadd.f32 %v2366_v31, %v2365_v28  ;;  %v1441_v0 = vadd.f32 %v1426_v38, %v4388_v19 }
 0x1ef   :  { %v1431_v32 = vadd.f32 %v2367_v17, %v1341_v59  ;;  %v2368_v52 = vpop.f32.mrb[48].mxu0 }
 0x1f0   :  { %v2369_v33 = vpop.f32.mrb[49].mxu0 }
 0x1f1   :  { %v2370_v35 = vadd.f32 %v2369_v33, %v2368_v52  ;;  %v1442_v60 = vadd.f32 %v1431_v32, %v4390_v25 }
 0x1f3   :  { %v1436_v10 = vadd.f32 %v2370_v35, %v1346_v63 }
 0x1f5   :  { %v1443_v2 = vadd.f32 %v1436_v10, %v4392_v27 }
 0x1fa   :  { %v1707_v36 = vpop.f32.mrb[44].mxu1 }
 0x1fb   :  { %v2863_v11 = vadd.f32 %v1707_v36, %v1441_v0  ;;  %v2500_v9 = vpop.f32.mrb[45].mxu1 }
 0x1fd   :  { %1729 = vst.msk [vmem:[#allocation2 + $0x10] sm:$0xff] %vm1726_vm1, %v2863_v11 }
 0x1fe   :  { %v1712_v34 = vpop.f32.mrb[46].mxu1 }
 0x1ff   :  { %v2864_v37 = vadd.f32 %v1712_v34, %v1442_v60  ;;  %v1697_v39 = vpop.f32.mrb[50].mxu0  ;;  %v2503_v44 = vpop.f32.mrb[47].mxu1 }
 0x200   :  { %v1721_v19 = vadd.f32 %v1697_v39, %v1580_v21  ;;  %v2494_v40 = vpop.f32.mrb[51].mxu0 }
 0x201   :  { %1730 = vst.msk [vmem:[#allocation2 + $0x18] sm:$0xff] %vm1726_vm1, %v2864_v37 }
 0x202   :  { %1727 = vst.msk [vmem:[#allocation2] sm:$0xff] %vm1726_vm1, %v1721_v19  ;;  %v1717_v25 = vpop.f32.mrb[48].mxu1 }
 0x203   :  { %v2865_v27 = vadd.f32 %v1717_v25, %v1443_v2  ;;  %v1702_v51 = vpop.f32.mrb[52].mxu0  ;;  %v2506_v41 = vpop.f32.mrb[49].mxu1 }
 0x204   :  { %v1722_v42 = vadd.f32 %v1702_v51, %v1581_v30  ;;  %v2497_v56 = vpop.f32.mrb[53].mxu0 }
 0x205   :  { %1731 = vst.msk [vmem:[#allocation2 + $0x20] sm:$0xff] %vm1726_vm1, %v2865_v27 }
 0x206   :  { %1728 = vst.msk [vmem:[#allocation2 + $0x8] sm:$0xff] %vm1726_vm1, %v1722_v42 }
 0x207   :  { %2909 = shalt.err (!%p2906_p4)
}
 0x208   :  { %s2910_s27 = scalar_lea.hbm %s4418_s2, 640 }
 0x209   :  { %p2911_p5 = scmp.ne.s32.totalorder %s4418_s2, %s2910_s27  ;;  %p2914_p6 = scmp.lt.u32.totalorder %s2910_s27, %s4418_s2 }
 0x20b   :  { %p2916_p7 = pnand %p2914_p6, %p2911_p5 }
 0x20d   :  { %2919 = shalt.err (!%p2916_p7)
}
 0x20e   :  { %s2932_s4 = smov 128   ;;  %s2933_s5 = smov 8  }
 0x20f   :  { %1743 = dma.vmem_to_hbm [thread:$0]  %s1738_s23, 640, %s4418_s2, [#allocation3], %s2932_s4, %s2932_s4, %s2933_s5  }
 0x210   :  { %2920 = dma.done.wait [#allocation3], 640  }
 0x211   :  { %2921 = vsyncadd [#allocation3], 4294966656 }
 0x212   :  { %1747 = vsyncpa [#allocation3], 1 }

</bundles_post_ra>
